<compile_context>
chip_gen: v7x
topology: tpu7x:2x2x1
jax: 0.10.0
libtpu: 0.0.40
codegen_flags: <defaults>
</compile_context>

<pallas_src>
import jax
import jax.numpy as jnp
from jax.experimental import pallas as pl
from jax.experimental.pallas import tpu as pltpu


def _round_up(x, m):
    return ((x + m - 1) // m) * m


def _device_info():
    """Best-effort (vmem_capacity_bytes, num_tensorcores) query."""
    vmem_cap = None
    num_cores = 1
    try:
        info = pltpu.get_tpu_info()
        cap = int(getattr(info, "vmem_capacity_bytes", 0))
        if cap > 0:
            vmem_cap = cap
        for attr in ("num_cores", "num_tensorcores", "tensor_core_count",
                     "core_count"):
            v = getattr(info, attr, None)
            if v:
                num_cores = max(num_cores, int(v))
                break
    except Exception:
        # TODO(synk): hardware query unavailable; fall back to conservative,
        # previously-proven-safe defaults (64 MiB limit, single core).
        pass
    if num_cores <= 1:
        try:
            num_cores = max(1, int(getattr(jax.devices()[0], "num_cores", 1)))
        except Exception:
            pass
    return vmem_cap, num_cores


def svd_mlp_kernel(x_ref, vf_ref, w_ref, dv_ref, du_ref, o_ref,
                   xg_ref, xu_ref, acc_ref):
    """Grid = (token_tiles, intermediate_chunks).

    x_ref : [tm, H]       token tile (input dtype)
    vf_ref: [H, 2*rp]     fused [gate_v | up_v] factor (compute dtype)
    w_ref : [2, rp, ti]   stacked [gate_u ; up_u] chunk
    dv_ref: [ti, rp]      down_v chunk
    du_ref: [rp, H]       down_u
    xg_ref: [tm, rp]      scratch: x @ gate_v   (persists across j)
    xu_ref: [tm, rp]      scratch: x @ up_v     (persists across j)
    acc_ref:[tm, rp]      scratch: f32 accumulator for h @ down_v
    """
    j = pl.program_id(1)
    cdt = vf_ref.dtype                       # MXU compute dtype (bf16)
    rp = xg_ref.shape[1]

    # --- once per token tile: fused V projection + accumulator reset --------
    # TODO(synk): if Ip//ti is small, this prologue matmul is a visible bubble;
    # consider folding it into the first chunk's schedule.
    @pl.when(j == 0)
    def _init():
        xv = jnp.dot(x_ref[...].astype(cdt), vf_ref[...],
                     preferred_element_type=jnp.float32)        # [tm, 2rp]
        xg_ref[...] = xv[:, :rp].astype(cdt)                    # 128-aligned split
        xu_ref[...] = xv[:, rp:].astype(cdt)
        acc_ref[...] = jnp.zeros_like(acc_ref)

    # --- per I-chunk: gate / up / SiLU / partial down_v ----------------------
    gate = jnp.dot(xg_ref[...], w_ref[0],
                   preferred_element_type=jnp.float32)          # [tm, ti] f32
    up = jnp.dot(xu_ref[...], w_ref[1],
                 preferred_element_type=jnp.float32)            # [tm, ti] f32
    h = (gate * jax.nn.sigmoid(gate)) * up                      # SiLU(gate)*up
    acc_ref[...] += jnp.dot(h.astype(cdt), dv_ref[...],
                            preferred_element_type=jnp.float32)  # [tm, rp]

    # --- once per token tile: final down_u projection ------------------------
    @pl.when(j == pl.num_programs(1) - 1)
    def _finalize():
        # bf16 cast of the rank-rp bottleneck is covered by the test tolerance;
        # keep acc in f32 here if tighter accuracy is ever required.
        out = jnp.dot(acc_ref[...].astype(cdt), du_ref[...],
                      preferred_element_type=jnp.float32)       # [tm, H]
        o_ref[...] = out.astype(o_ref.dtype)


def svd_olmoe_mlp(x, params, *, token_tile=None, i_tile=None,
                  compute_dtype=jnp.bfloat16):
    """x: [B, S, H] (f32 or bf16). params: (in, out)-layout weight matrices."""
    B, S, H = x.shape
    T = B * S
    x2d = x.reshape(T, H)

    gate_v, gate_u = params["gate_v"], params["gate_u"]
    up_v, up_u = params["up_v"], params["up_u"]
    down_v, down_u = params["down_v"], params["down_u"]
    r = gate_v.shape[1]
    I = gate_u.shape[1]

    # --- per-generation budgets ----------------------------------------------
    vmem_cap, num_cores = _device_info()
    if vmem_cap is None:
        vmem_limit = 64 * 1024 * 1024                 # proven-safe fallback
    else:
        # ~25% headroom for Mosaic internal scratch + x/out double buffers:
        # 128 MiB (v5e/v6e) -> 96 MiB; 64 MiB (v7x) -> 48 MiB.
        vmem_limit = min(int(vmem_cap) * 3 // 4, 110 * 1024 * 1024)
    big_vmem = vmem_limit >= 90 * 1024 * 1024
    if token_tile is None:
        token_tile = 512 if big_vmem else 256
    if i_tile is None:
        i_tile = 2048 if big_vmem else 1024

    # --- weight prep (in production, hoist this out of the step function) ----
    rp = _round_up(r, 128)                            # lane-align the rank
    if rp != r:
        gate_v = jnp.pad(gate_v, ((0, 0), (0, rp - r)))
        up_v = jnp.pad(up_v, ((0, 0), (0, rp - r)))
        gate_u = jnp.pad(gate_u, ((0, rp - r), (0, 0)))
        up_u = jnp.pad(up_u, ((0, rp - r), (0, 0)))
        down_v = jnp.pad(down_v, ((0, 0), (0, rp - r)))
        down_u = jnp.pad(down_u, ((0, rp - r), (0, 0)))

    vf = jnp.concatenate([gate_v, up_v], axis=1).astype(compute_dtype)  # [H,2rp]
    w = jnp.stack([gate_u, up_u], axis=0).astype(compute_dtype)          # [2,rp,I]
    dv = down_v.astype(compute_dtype)                                    # [I,rp]
    du = down_u.astype(compute_dtype)                                    # [rp,H]

    # --- token tiling ---------------------------------------------------------
    pack = 16 if compute_dtype == jnp.bfloat16 else 8
    tm = min(token_tile, _round_up(T, pack))
    if num_cores >= 2:
        # Split the parallel token axis so every TensorCore gets >= 1 tile.
        tm = max(pack, min(tm, _round_up(pl.cdiv(T, num_cores), pack)))
    Tp = _round_up(T, tm)
    if Tp != T:
        x2d = jnp.pad(x2d, ((0, Tp - T), (0, 0)))

    # --- intermediate tiling (zero pads are inert: SiLU(0)*0 == 0) -----------
    ti = min(i_tile, _round_up(I, 128))
    Ip = _round_up(I, ti)
    if Ip != I:
        w = jnp.pad(w, ((0, 0), (0, 0), (0, Ip - I)))
        dv = jnp.pad(dv, ((0, Ip - I), (0, 0)))

    flops = int(6 * Tp * rp * (H + Ip))               # 5 matmuls (fused V = 2)
    transcendentals = int(Tp * Ip)                    # sigmoid in SiLU
    bytes_accessed = int(
        x2d.size * x2d.dtype.itemsize + Tp * H * x.dtype.itemsize
        + sum(a.size * a.dtype.itemsize for a in (vf, w, dv, du)))

    def build(single_buffer_consts):
        const_kw = ({"pipeline_mode": pl.Buffered(1)}
                    if single_buffer_consts else {})
        grid_spec = pltpu.PrefetchScalarGridSpec(
            num_scalar_prefetch=0,
            grid=(Tp // tm, Ip // ti),
            in_specs=[
                pl.BlockSpec((tm, H), lambda i, j: (i, 0)),            # x tile
                pl.BlockSpec((H, 2 * rp), lambda i, j: (0, 0),         # fused V
                             **const_kw),
                # TODO(synk): if profiling shows exposed DMA on the inner axis
                # at small ti, deepen these two specs to pl.Buffered(3).
                pl.BlockSpec((2, rp, ti), lambda i, j: (0, 0, j)),     # gu|uu
                pl.BlockSpec((ti, rp), lambda i, j: (j, 0)),           # down_v
                pl.BlockSpec((rp, H), lambda i, j: (0, 0),             # down_u
                             **const_kw),
            ],
            out_specs=pl.BlockSpec((tm, H), lambda i, j: (i, 0)),
            scratch_shapes=[
                pltpu.VMEM((tm, rp), compute_dtype),   # x @ gate_v
                pltpu.VMEM((tm, rp), compute_dtype),   # x @ up_v
                pltpu.VMEM((tm, rp), jnp.float32),     # h @ down_v accumulator
            ],
        )
        return pl.pallas_call(
            svd_mlp_kernel,
            out_shape=jax.ShapeDtypeStruct((Tp, H), x.dtype),
            grid_spec=grid_spec,
            compiler_params=pltpu.CompilerParams(
                dimension_semantics=("parallel", "arbitrary"),
                vmem_limit_bytes=vmem_limit),
            cost_estimate=pl.CostEstimate(
                flops=flops, transcendentals=transcendentals,
                bytes_accessed=bytes_accessed),
        )

    try:
        out2d = build(True)(x2d, vf, w, dv, du)
    except Exception:
        # pl.Buffered(1) unsupported on this build; only cost of the fallback
        # is an extra (unused) VMEM copy of the constant vf / du blocks.
        out2d = build(False)(x2d, vf, w, dv, du)

    return out2d[:T].reshape(B, S, H)


def make_params(key, hidden_size, intermediate_size, lora_rank,
                dtype=jnp.float32):
    """Deterministic synthetic weights, stored transposed to (in, out)."""
    ks = jax.random.split(key, 6)

    def init(k, shape):
        return (jax.random.normal(k, shape) / jnp.sqrt(shape[0])).astype(dtype)

    return {
        "gate_v": init(ks[0], (hidden_size, lora_rank)),
        "gate_u": init(ks[1], (lora_rank, intermediate_size)),
        "up_v":   init(ks[2], (hidden_size, lora_rank)),
        "up_u":   init(ks[3], (lora_rank, intermediate_size)),
        "down_v": init(ks[4], (intermediate_size, lora_rank)),
        "down_u": init(ks[5], (lora_rank, hidden_size)),
    }


def reference(x2d, p):
    """Pure-JAX f32 reference of the PyTorch forward (SiLU activation)."""
    up = (x2d @ p["up_v"]) @ p["up_u"]
    gate = (x2d @ p["gate_v"]) @ p["gate_u"]
    h = jax.nn.silu(gate) * up
    return (h @ p["down_v"]) @ p["down_u"]


if __name__ == "__main__":
    # Small shapes consistent with the module: hidden=128, intermediate=256,
    # lora_rank=64, batch=2, seq=8.
    B, S = 2, 8
    hidden_size, intermediate_size, lora_rank = 128, 256, 64

    key = jax.random.PRNGKey(0)
    kx, kp = jax.random.split(key)
    x = jax.random.normal(kx, (B, S, hidden_size), dtype=jnp.float32)
    params = make_params(kp, hidden_size, intermediate_size, lora_rank)

    out = jax.block_until_ready(svd_olmoe_mlp(x, params))
    assert out.shape == (B, S, hidden_size)

    ref = reference(x.reshape(-1, hidden_size).astype(jnp.float32),
                    params).reshape(B, S, hidden_size)
    scale = float(jnp.max(jnp.abs(ref))) + 1e-6

    # Kernel computes matmuls in bf16 (f32 accumulate); compare against the f32
    # reference with a correspondingly loosened tolerance.
    err = float(jnp.max(jnp.abs(out.astype(jnp.float32) - ref)))
    assert err / scale < 5e-2, f"mismatch vs reference: rel err {err / scale}"

    # Recommended production path: bf16 activations in and out (halves HBM I/O).
    out_bf16 = jax.block_until_ready(svd_olmoe_mlp(x.astype(jnp.bfloat16),
                                                   params))
    err_bf = float(jnp.max(jnp.abs(out_bf16.astype(jnp.float32) - ref)))
    assert err_bf / scale < 1e-1, f"bf16 path mismatch: rel err {err_bf / scale}"

    print("KERNEL_OK")
</pallas_src>

<mosaic_0001>
module attributes {stable_mosaic.version = 11 : i64} {
  func.func @svd_mlp_kernel(%arg0: i32, %arg1: i32, %arg2: memref<16x128xf32, #tpu.memory_space<vmem>>, %arg3: memref<128x256xbf16, #tpu.memory_space<vmem>>, %arg4: memref<2x128x256xbf16, #tpu.memory_space<vmem>>, %arg5: memref<256x128xbf16, #tpu.memory_space<vmem>>, %arg6: memref<128x128xbf16, #tpu.memory_space<vmem>>, %arg7: memref<16x128xf32, #tpu.memory_space<vmem>>, %arg8: memref<16x128xbf16, #tpu.memory_space<vmem>>, %arg9: memref<16x128xbf16, #tpu.memory_space<vmem>>, %arg10: memref<16x128xf32, #tpu.memory_space<vmem>>) attributes {dimension_semantics = [#tpu.dimension_semantics<parallel>, #tpu.dimension_semantics<arbitrary>], iteration_bounds = array<i64: 1, 1>, scalar_prefetch = 0 : i64, scratch_operands = 3 : i64, tpu.core_type = #tpu.core_type<tc>, window_params = [{transform_indices = @transform_0, window_bounds = array<i64: 16, 128>}, {pipeline_mode = #tpu.pipeline_mode<synchronous>, transform_indices = @transform_1, window_bounds = array<i64: 128, 256>}, {transform_indices = @transform_2, window_bounds = array<i64: 2, 128, 256>}, {transform_indices = @transform_3, window_bounds = array<i64: 256, 128>}, {pipeline_mode = #tpu.pipeline_mode<synchronous>, transform_indices = @transform_4, window_bounds = array<i64: 128, 128>}, {transform_indices = @transform_5, window_bounds = array<i64: 16, 128>}]} {
    %c0_i32 = arith.constant 0 : i32
    %0 = arith.cmpi eq, %arg1, %c0_i32 : i32
    %1 = arith.extui %0 : i1 to i32
    %c0_i32_0 = arith.constant 0 : i32
    %2 = arith.cmpi ne, %1, %c0_i32_0 : i32
    scf.if %2 {
      %c0_20 = arith.constant 0 : index
      %c0_21 = arith.constant 0 : index
      %27 = vector.load %arg2[%c0_20, %c0_21] : memref<16x128xf32, #tpu.memory_space<vmem>>, vector<16x128xf32>
      %28 = arith.truncf %27 : vector<16x128xf32> to vector<16x128xbf16>
      %c0_22 = arith.constant 0 : index
      %c0_23 = arith.constant 0 : index
      %29 = vector.load %arg3[%c0_22, %c0_23] : memref<128x256xbf16, #tpu.memory_space<vmem>>, vector<128x256xbf16>
      %cst_24 = arith.constant dense<0.000000e+00> : vector<16x256xf32>
      %30 = tpu.matmul %28, %29, %cst_24 {dimension_numbers = #tpu.dot_dimension_numbers<[1], [0], [0], [1], [0, 0, 1, 1], [], []>} : vector<16x128xbf16>, vector<128x256xbf16>, vector<16x256xf32> -> vector<16x256xf32>
      %31 = vector.extract_strided_slice %30 {offsets = [0, 0], sizes = [16, 128], strides = [1, 1]} : vector<16x256xf32> to vector<16x128xf32>
      %32 = arith.truncf %31 : vector<16x128xf32> to vector<16x128xbf16>
      %c0_25 = arith.constant 0 : index
      %c0_26 = arith.constant 0 : index
      %33 = vector.load %arg8[%c0_25, %c0_26] : memref<16x128xbf16, #tpu.memory_space<vmem>>, vector<16x128xbf16>
      tpu.vector_store %arg8[%c0_25, %c0_26], %32 {strides = array<i32>} : memref<16x128xbf16, #tpu.memory_space<vmem>>, vector<16x128xbf16>,
      %34 = vector.extract_strided_slice %30 {offsets = [0, 128], sizes = [16, 128], strides = [1, 1]} : vector<16x256xf32> to vector<16x128xf32>
      %35 = arith.truncf %34 : vector<16x128xf32> to vector<16x128xbf16>
      %c0_27 = arith.constant 0 : index
      %c0_28 = arith.constant 0 : index
      %36 = vector.load %arg9[%c0_27, %c0_28] : memref<16x128xbf16, #tpu.memory_space<vmem>>, vector<16x128xbf16>
      tpu.vector_store %arg9[%c0_27, %c0_28], %35 {strides = array<i32>} : memref<16x128xbf16, #tpu.memory_space<vmem>>, vector<16x128xbf16>,
      %cst_29 = arith.constant 0.000000e+00 : f32
      %37 = vector.broadcast %cst_29 : f32 to vector<16x128xf32>
      %c0_30 = arith.constant 0 : index
      %c0_31 = arith.constant 0 : index
      %38 = vector.load %arg10[%c0_30, %c0_31] : memref<16x128xf32, #tpu.memory_space<vmem>>, vector<16x128xf32>
      tpu.vector_store %arg10[%c0_30, %c0_31], %37 {strides = array<i32>} : memref<16x128xf32, #tpu.memory_space<vmem>>, vector<16x128xf32>,
    } else {
    }
    %c0 = arith.constant 0 : index
    %c0_1 = arith.constant 0 : index
    %3 = vector.load %arg8[%c0, %c0_1] : memref<16x128xbf16, #tpu.memory_space<vmem>>, vector<16x128xbf16>
    %c0_2 = arith.constant 0 : index
    %c0_3 = arith.constant 0 : index
    %c0_4 = arith.constant 0 : index
    %4 = vector.load %arg4[%c0_2, %c0_3, %c0_4] : memref<2x128x256xbf16, #tpu.memory_space<vmem>>, vector<1x128x256xbf16>
    %5 = vector.shape_cast %4 : vector<1x128x256xbf16> to vector<128x256xbf16>
    %cst = arith.constant dense<0.000000e+00> : vector<16x256xf32>
    %6 = tpu.matmul %3, %5, %cst {dimension_numbers = #tpu.dot_dimension_numbers<[1], [0], [0], [1], [0, 0, 1, 1], [], []>} : vector<16x128xbf16>, vector<128x256xbf16>, vector<16x256xf32> -> vector<16x256xf32>
    %c0_5 = arith.constant 0 : index
    %c0_6 = arith.constant 0 : index
    %7 = vector.load %arg9[%c0_5, %c0_6] : memref<16x128xbf16, #tpu.memory_space<vmem>>, vector<16x128xbf16>
    %c1 = arith.constant 1 : index
    %c0_7 = arith.constant 0 : index
    %c0_8 = arith.constant 0 : index
    %8 = vector.load %arg4[%c1, %c0_7, %c0_8] : memref<2x128x256xbf16, #tpu.memory_space<vmem>>, vector<1x128x256xbf16>
    %9 = vector.shape_cast %8 : vector<1x128x256xbf16> to vector<128x256xbf16>
    %cst_9 = arith.constant dense<0.000000e+00> : vector<16x256xf32>
    %10 = tpu.matmul %7, %9, %cst_9 {dimension_numbers = #tpu.dot_dimension_numbers<[1], [0], [0], [1], [0, 0, 1, 1], [], []>} : vector<16x128xbf16>, vector<128x256xbf16>, vector<16x256xf32> -> vector<16x256xf32>
    %11 = arith.negf %6 : vector<16x256xf32>
    %12 = math.exp %11 : vector<16x256xf32>
    %cst_10 = arith.constant 1.000000e+00 : f32
    %13 = vector.broadcast %cst_10 : f32 to vector<16x256xf32>
    %14 = arith.addf %13, %12 : vector<16x256xf32>
    %15 = arith.divf %13, %14 : vector<16x256xf32>
    %16 = arith.mulf %6, %15 : vector<16x256xf32>
    %17 = arith.mulf %16, %10 : vector<16x256xf32>
    %c0_11 = arith.constant 0 : index
    %c0_12 = arith.constant 0 : index
    %18 = vector.load %arg10[%c0_11, %c0_12] : memref<16x128xf32, #tpu.memory_space<vmem>>, vector<16x128xf32>
    %19 = arith.truncf %17 : vector<16x256xf32> to vector<16x256xbf16>
    %c0_13 = arith.constant 0 : index
    %c0_14 = arith.constant 0 : index
    %20 = vector.load %arg5[%c0_13, %c0_14] : memref<256x128xbf16, #tpu.memory_space<vmem>>, vector<256x128xbf16>
    %cst_15 = arith.constant dense<0.000000e+00> : vector<16x128xf32>
    %21 = tpu.matmul %19, %20, %cst_15 {dimension_numbers = #tpu.dot_dimension_numbers<[1], [0], [0], [1], [0, 0, 1, 1], [], []>} : vector<16x256xbf16>, vector<256x128xbf16>, vector<16x128xf32> -> vector<16x128xf32>
    %22 = arith.addf %18, %21 : vector<16x128xf32>
    %c0_16 = arith.constant 0 : index
    %c0_17 = arith.constant 0 : index
    %23 = vector.load %arg10[%c0_16, %c0_17] : memref<16x128xf32, #tpu.memory_space<vmem>>, vector<16x128xf32>
    tpu.vector_store %arg10[%c0_16, %c0_17], %22 {strides = array<i32>} : memref<16x128xf32, #tpu.memory_space<vmem>>, vector<16x128xf32>,
    %c0_i32_18 = arith.constant 0 : i32
    %24 = arith.cmpi eq, %arg1, %c0_i32_18 : i32
    %25 = arith.extui %24 : i1 to i32
    %c0_i32_19 = arith.constant 0 : i32
    %26 = arith.cmpi ne, %25, %c0_i32_19 : i32
    scf.if %26 {
      %c0_20 = arith.constant 0 : index
      %c0_21 = arith.constant 0 : index
      %27 = vector.load %arg10[%c0_20, %c0_21] : memref<16x128xf32, #tpu.memory_space<vmem>>, vector<16x128xf32>
      %28 = arith.truncf %27 : vector<16x128xf32> to vector<16x128xbf16>
      %c0_22 = arith.constant 0 : index
      %c0_23 = arith.constant 0 : index
      %29 = vector.load %arg6[%c0_22, %c0_23] : memref<128x128xbf16, #tpu.memory_space<vmem>>, vector<128x128xbf16>
      %cst_24 = arith.constant dense<0.000000e+00> : vector<16x128xf32>
      %30 = tpu.matmul %28, %29, %cst_24 {dimension_numbers = #tpu.dot_dimension_numbers<[1], [0], [0], [1], [0, 0, 1, 1], [], []>} : vector<16x128xbf16>, vector<128x128xbf16>, vector<16x128xf32> -> vector<16x128xf32>
      %c0_25 = arith.constant 0 : index
      %c0_26 = arith.constant 0 : index
      %31 = vector.load %arg7[%c0_25, %c0_26] : memref<16x128xf32, #tpu.memory_space<vmem>>, vector<16x128xf32>
      tpu.vector_store %arg7[%c0_25, %c0_26], %30 {strides = array<i32>} : memref<16x128xf32, #tpu.memory_space<vmem>>, vector<16x128xf32>,
    } else {
    }
    return
  }
  func.func @transform_0(%arg0: i32, %arg1: i32) -> (i32, i32) {
    %c0_i32 = arith.constant 0 : i32
    %c0_i32_0 = arith.constant 0 : i32
    return %arg0, %c0_i32 : i32, i32
  }
  func.func @transform_1(%arg0: i32, %arg1: i32) -> (i32, i32) {
    %c0_i32 = arith.constant 0 : i32
    %c0_i32_0 = arith.constant 0 : i32
    %c0_i32_1 = arith.constant 0 : i32
    return %c0_i32, %c0_i32_0 : i32, i32
  }
  func.func @transform_2(%arg0: i32, %arg1: i32) -> (i32, i32, i32) {
    %c0_i32 = arith.constant 0 : i32
    %c0_i32_0 = arith.constant 0 : i32
    %c0_i32_1 = arith.constant 0 : i32
    return %c0_i32, %c0_i32_0, %arg1 : i32, i32, i32
  }
  func.func @transform_3(%arg0: i32, %arg1: i32) -> (i32, i32) {
    %c0_i32 = arith.constant 0 : i32
    %c0_i32_0 = arith.constant 0 : i32
    return %arg1, %c0_i32 : i32, i32
  }
  func.func @transform_4(%arg0: i32, %arg1: i32) -> (i32, i32) {
    %c0_i32 = arith.constant 0 : i32
    %c0_i32_0 = arith.constant 0 : i32
    %c0_i32_1 = arith.constant 0 : i32
    return %c0_i32, %c0_i32_0 : i32, i32
  }
  func.func @transform_5(%arg0: i32, %arg1: i32) -> (i32, i32) {
    %c0_i32 = arith.constant 0 : i32
    %c0_i32_0 = arith.constant 0 : i32
    return %arg0, %c0_i32 : i32, i32
  }
}

module attributes {stable_mosaic.version = 11 : i64} {
  func.func @svd_mlp_kernel(%arg0: i32, %arg1: i32, %arg2: memref<16x128xf32, #tpu.memory_space<vmem>>, %arg3: memref<128x256xbf16, #tpu.memory_space<vmem>>, %arg4: memref<2x128x256xbf16, #tpu.memory_space<vmem>>, %arg5: memref<256x128xbf16, #tpu.memory_space<vmem>>, %arg6: memref<128x128xbf16, #tpu.memory_space<vmem>>, %arg7: memref<16x128xf32, #tpu.memory_space<vmem>>, %arg8: memref<16x128xbf16, #tpu.memory_space<vmem>>, %arg9: memref<16x128xbf16, #tpu.memory_space<vmem>>, %arg10: memref<16x128xf32, #tpu.memory_space<vmem>>) attributes {dimension_semantics = [#tpu.dimension_semantics<parallel>, #tpu.dimension_semantics<arbitrary>], iteration_bounds = array<i64: 1, 1>, scalar_prefetch = 0 : i64, scratch_operands = 3 : i64, tpu.core_type = #tpu.core_type<tc>, window_params = [{transform_indices = @transform_0, window_bounds = array<i64: 16, 128>}, {pipeline_mode = #tpu.pipeline_mode<synchronous>, transform_indices = @transform_1, window_bounds = array<i64: 128, 256>}, {transform_indices = @transform_2, window_bounds = array<i64: 2, 128, 256>}, {transform_indices = @transform_3, window_bounds = array<i64: 256, 128>}, {pipeline_mode = #tpu.pipeline_mode<synchronous>, transform_indices = @transform_4, window_bounds = array<i64: 128, 128>}, {transform_indices = @transform_5, window_bounds = array<i64: 16, 128>}]} {
    %c0_i32 = arith.constant 0 : i32
    %0 = arith.cmpi eq, %arg1, %c0_i32 : i32
    %1 = arith.extui %0 : i1 to i32
    %c0_i32_0 = arith.constant 0 : i32
    %2 = arith.cmpi ne, %1, %c0_i32_0 : i32
    scf.if %2 {
      %c0_20 = arith.constant 0 : index
      %c0_21 = arith.constant 0 : index
      %27 = vector.load %arg2[%c0_20, %c0_21] : memref<16x128xf32, #tpu.memory_space<vmem>>, vector<16x128xf32>
      %28 = arith.truncf %27 : vector<16x128xf32> to vector<16x128xbf16>
      %c0_22 = arith.constant 0 : index
      %c0_23 = arith.constant 0 : index
      %29 = vector.load %arg3[%c0_22, %c0_23] : memref<128x256xbf16, #tpu.memory_space<vmem>>, vector<128x256xbf16>
      %cst_24 = arith.constant dense<0.000000e+00> : vector<16x256xf32>
      %30 = tpu.matmul %28, %29, %cst_24 {dimension_numbers = #tpu.dot_dimension_numbers<[1], [0], [0], [1], [0, 0, 1, 1], [], []>} : vector<16x128xbf16>, vector<128x256xbf16>, vector<16x256xf32> -> vector<16x256xf32>
      %31 = vector.extract_strided_slice %30 {offsets = [0, 0], sizes = [16, 128], strides = [1, 1]} : vector<16x256xf32> to vector<16x128xf32>
      %32 = arith.truncf %31 : vector<16x128xf32> to vector<16x128xbf16>
      %c0_25 = arith.constant 0 : index
      %c0_26 = arith.constant 0 : index
      %33 = vector.load %arg8[%c0_25, %c0_26] : memref<16x128xbf16, #tpu.memory_space<vmem>>, vector<16x128xbf16>
      tpu.vector_store %arg8[%c0_25, %c0_26], %32 {strides = array<i32>} : memref<16x128xbf16, #tpu.memory_space<vmem>>, vector<16x128xbf16>,
      %34 = vector.extract_strided_slice %30 {offsets = [0, 128], sizes = [16, 128], strides = [1, 1]} : vector<16x256xf32> to vector<16x128xf32>
      %35 = arith.truncf %34 : vector<16x128xf32> to vector<16x128xbf16>
      %c0_27 = arith.constant 0 : index
      %c0_28 = arith.constant 0 : index
      %36 = vector.load %arg9[%c0_27, %c0_28] : memref<16x128xbf16, #tpu.memory_space<vmem>>, vector<16x128xbf16>
      tpu.vector_store %arg9[%c0_27, %c0_28], %35 {strides = array<i32>} : memref<16x128xbf16, #tpu.memory_space<vmem>>, vector<16x128xbf16>,
      %cst_29 = arith.constant 0.000000e+00 : f32
      %37 = vector.broadcast %cst_29 : f32 to vector<16x128xf32>
      %c0_30 = arith.constant 0 : index
      %c0_31 = arith.constant 0 : index
      %38 = vector.load %arg10[%c0_30, %c0_31] : memref<16x128xf32, #tpu.memory_space<vmem>>, vector<16x128xf32>
      tpu.vector_store %arg10[%c0_30, %c0_31], %37 {strides = array<i32>} : memref<16x128xf32, #tpu.memory_space<vmem>>, vector<16x128xf32>,
    } else {
    }
    %c0 = arith.constant 0 : index
    %c0_1 = arith.constant 0 : index
    %3 = vector.load %arg8[%c0, %c0_1] : memref<16x128xbf16, #tpu.memory_space<vmem>>, vector<16x128xbf16>
    %c0_2 = arith.constant 0 : index
    %c0_3 = arith.constant 0 : index
    %c0_4 = arith.constant 0 : index
    %4 = vector.load %arg4[%c0_2, %c0_3, %c0_4] : memref<2x128x256xbf16, #tpu.memory_space<vmem>>, vector<1x128x256xbf16>
    %5 = vector.shape_cast %4 : vector<1x128x256xbf16> to vector<128x256xbf16>
    %cst = arith.constant dense<0.000000e+00> : vector<16x256xf32>
    %6 = tpu.matmul %3, %5, %cst {dimension_numbers = #tpu.dot_dimension_numbers<[1], [0], [0], [1], [0, 0, 1, 1], [], []>} : vector<16x128xbf16>, vector<128x256xbf16>, vector<16x256xf32> -> vector<16x256xf32>
    %c0_5 = arith.constant 0 : index
    %c0_6 = arith.constant 0 : index
    %7 = vector.load %arg9[%c0_5, %c0_6] : memref<16x128xbf16, #tpu.memory_space<vmem>>, vector<16x128xbf16>
    %c1 = arith.constant 1 : index
    %c0_7 = arith.constant 0 : index
    %c0_8 = arith.constant 0 : index
    %8 = vector.load %arg4[%c1, %c0_7, %c0_8] : memref<2x128x256xbf16, #tpu.memory_space<vmem>>, vector<1x128x256xbf16>
    %9 = vector.shape_cast %8 : vector<1x128x256xbf16> to vector<128x256xbf16>
    %cst_9 = arith.constant dense<0.000000e+00> : vector<16x256xf32>
    %10 = tpu.matmul %7, %9, %cst_9 {dimension_numbers = #tpu.dot_dimension_numbers<[1], [0], [0], [1], [0, 0, 1, 1], [], []>} : vector<16x128xbf16>, vector<128x256xbf16>, vector<16x256xf32> -> vector<16x256xf32>
    %11 = arith.negf %6 : vector<16x256xf32>
    %12 = math.exp %11 : vector<16x256xf32>
    %cst_10 = arith.constant 1.000000e+00 : f32
    %13 = vector.broadcast %cst_10 : f32 to vector<16x256xf32>
    %14 = arith.addf %13, %12 : vector<16x256xf32>
    %15 = arith.divf %13, %14 : vector<16x256xf32>
    %16 = arith.mulf %6, %15 : vector<16x256xf32>
    %17 = arith.mulf %16, %10 : vector<16x256xf32>
    %c0_11 = arith.constant 0 : index
    %c0_12 = arith.constant 0 : index
    %18 = vector.load %arg10[%c0_11, %c0_12] : memref<16x128xf32, #tpu.memory_space<vmem>>, vector<16x128xf32>
    %19 = arith.truncf %17 : vector<16x256xf32> to vector<16x256xbf16>
    %c0_13 = arith.constant 0 : index
    %c0_14 = arith.constant 0 : index
    %20 = vector.load %arg5[%c0_13, %c0_14] : memref<256x128xbf16, #tpu.memory_space<vmem>>, vector<256x128xbf16>
    %cst_15 = arith.constant dense<0.000000e+00> : vector<16x128xf32>
    %21 = tpu.matmul %19, %20, %cst_15 {dimension_numbers = #tpu.dot_dimension_numbers<[1], [0], [0], [1], [0, 0, 1, 1], [], []>} : vector<16x256xbf16>, vector<256x128xbf16>, vector<16x128xf32> -> vector<16x128xf32>
    %22 = arith.addf %18, %21 : vector<16x128xf32>
    %c0_16 = arith.constant 0 : index
    %c0_17 = arith.constant 0 : index
    %23 = vector.load %arg10[%c0_16, %c0_17] : memref<16x128xf32, #tpu.memory_space<vmem>>, vector<16x128xf32>
    tpu.vector_store %arg10[%c0_16, %c0_17], %22 {strides = array<i32>} : memref<16x128xf32, #tpu.memory_space<vmem>>, vector<16x128xf32>,
    %c0_i32_18 = arith.constant 0 : i32
    %24 = arith.cmpi eq, %arg1, %c0_i32_18 : i32
    %25 = arith.extui %24 : i1 to i32
    %c0_i32_19 = arith.constant 0 : i32
    %26 = arith.cmpi ne, %25, %c0_i32_19 : i32
    scf.if %26 {
      %c0_20 = arith.constant 0 : index
      %c0_21 = arith.constant 0 : index
      %27 = vector.load %arg10[%c0_20, %c0_21] : memref<16x128xf32, #tpu.memory_space<vmem>>, vector<16x128xf32>
      %28 = arith.truncf %27 : vector<16x128xf32> to vector<16x128xbf16>
      %c0_22 = arith.constant 0 : index
      %c0_23 = arith.constant 0 : index
      %29 = vector.load %arg6[%c0_22, %c0_23] : memref<128x128xbf16, #tpu.memory_space<vmem>>, vector<128x128xbf16>
      %cst_24 = arith.constant dense<0.000000e+00> : vector<16x128xf32>
      %30 = tpu.matmul %28, %29, %cst_24 {dimension_numbers = #tpu.dot_dimension_numbers<[1], [0], [0], [1], [0, 0, 1, 1], [], []>} : vector<16x128xbf16>, vector<128x128xbf16>, vector<16x128xf32> -> vector<16x128xf32>
      %c0_25 = arith.constant 0 : index
      %c0_26 = arith.constant 0 : index
      %31 = vector.load %arg7[%c0_25, %c0_26] : memref<16x128xf32, #tpu.memory_space<vmem>>, vector<16x128xf32>
      tpu.vector_store %arg7[%c0_25, %c0_26], %30 {strides = array<i32>} : memref<16x128xf32, #tpu.memory_space<vmem>>, vector<16x128xf32>,
    } else {
    }
    return
  }
  func.func @transform_0(%arg0: i32, %arg1: i32) -> (i32, i32) {
    %c0_i32 = arith.constant 0 : i32
    %c0_i32_0 = arith.constant 0 : i32
    return %arg0, %c0_i32 : i32, i32
  }
  func.func @transform_1(%arg0: i32, %arg1: i32) -> (i32, i32) {
    %c0_i32 = arith.constant 0 : i32
    %c0_i32_0 = arith.constant 0 : i32
    %c0_i32_1 = arith.constant 0 : i32
    return %c0_i32, %c0_i32_0 : i32, i32
  }
  func.func @transform_2(%arg0: i32, %arg1: i32) -> (i32, i32, i32) {
    %c0_i32 = arith.constant 0 : i32
    %c0_i32_0 = arith.constant 0 : i32
    %c0_i32_1 = arith.constant 0 : i32
    return %c0_i32, %c0_i32_0, %arg1 : i32, i32, i32
  }
  func.func @transform_3(%arg0: i32, %arg1: i32) -> (i32, i32) {
    %c0_i32 = arith.constant 0 : i32
    %c0_i32_0 = arith.constant 0 : i32
    return %arg1, %c0_i32 : i32, i32
  }
  func.func @transform_4(%arg0: i32, %arg1: i32) -> (i32, i32) {
    %c0_i32 = arith.constant 0 : i32
    %c0_i32_0 = arith.constant 0 : i32
    %c0_i32_1 = arith.constant 0 : i32
    return %c0_i32, %c0_i32_0 : i32, i32
  }
  func.func @transform_5(%arg0: i32, %arg1: i32) -> (i32, i32) {
    %c0_i32 = arith.constant 0 : i32
    %c0_i32_0 = arith.constant 0 : i32
    return %arg0, %c0_i32 : i32, i32
  }
}

</mosaic_0001>

<bundles_post_ra>
// kernel: tpu_custom_call.1
= control target key start
LH: loop header
LB: loop body
LE: loop exit
PB: predicated region body
PF: predicated region fallthrough
CT: control target
= control target key end

     0   :  { %10 = vsyncpa [#allocation6], 0  ;;  %s1415_s0 = inlined_call_operand.hbm [shape: f32[16,128], index: 0, kind: input, shape index: {}]   ;;  %s1416_s1 = inlined_call_operand.hbm [shape: bf16[128,256], index: 1, kind: input, shape index: {}]   ;;  %s1417_s2 = inlined_call_operand.hbm [shape: bf16[2,128,256], index: 2, kind: input, shape index: {}]   ;;  %s1418_s3 = inlined_call_operand.hbm [shape: bf16[256,128], index: 3, kind: input, shape index: {}]   ;;  %s1419_s4 = inlined_call_operand.hbm [shape: bf16[128,128], index: 4, kind: input, shape index: {}]   ;;  %s1420_s5 = inlined_call_operand.hbm [shape: f32[16,128], index: 5, kind: output, shape index: {}]  }
   0x1   :  { %11 = vsyncpa [#allocation9], 0 }
   0x2   :  { %12 = vsyncpa [#allocation12], 0 }
   0x3   :  { %13 = vsyncpa [#allocation7], 0  ;;  %s1256_s18 = smov [#allocation8]   ;;  %s1257_s20 = smov [#allocation11]  }
   0x4   :  { %s31_s19 = sshll.u32 %s1256_s18, 4  ;;  %s55_s21 = sshll.u32 %s1257_s20, 4  ;;  %s32_s19 = int_to_ptr.vmem [resolvable:$true] %s31_s19  ;;  %s1299_s21 = int_to_ptr.vmem [resolvable:$true] %s55_s21 }
   0x5   :  { %s1116_s24 = scalar_lea.hbm %s1416_s1, 2048 }
   0x6   :  { %p1117_p0 = scmp.ne.s32.totalorder %s1416_s1, %s1116_s24  ;;  %p1120_p1 = scmp.lt.u32.totalorder %s1116_s24, %s1416_s1 }
   0x8   :  { %p1122_p2 = pnand %p1120_p1, %p1117_p0 }
   0xa   :  { %1125 = shalt.err (!%p1122_p2)
}
   0xb   :  { %s1126_s29 = scalar_lea.vmem %s32_s19, 2048  ;;  %p1131_p4 = scmp.lt.s32.totalorder %s32_s19, %s32_s19 }
   0xc   :  { %p1127_p3 = scmp.ne.s32.totalorder %s32_s19, %s1126_s29  ;;  %p1132_p5 = scmp.lt.s32.totalorder %s1126_s29, %s1126_s29 }
   0xe   :  { %p1133_p6 = por %p1132_p5, %p1131_p4 }
  0x10   :  { %p1134_p7 = pnand %p1133_p6, %p1127_p3 }
  0x12   :  { %1137 = shalt.err (!%p1134_p7)
}
  0x13   :  { %s1258_s30 = smov 128   ;;  %s1259_s6 = smov 8  }
  0x14   :  { %37 = dma.hbm_to_vmem [thread:$0]  %s1416_s1, 2048, %s32_s19, [#allocation9], %s1258_s30, %s1258_s30, %s1259_s6  }
  0x15   :  { %s1138_s11 = scalar_lea.hbm %s1418_s3, 2048 }
  0x16   :  { %p1139_p8 = scmp.ne.s32.totalorder %s1418_s3, %s1138_s11  ;;  %p1142_p9 = scmp.lt.u32.totalorder %s1138_s11, %s1418_s3 }
  0x18   :  { %p1144_p10 = pnand %p1142_p9, %p1139_p8 }
  0x1a   :  { %1147 = shalt.err (!%p1144_p10)
}
  0x1b   :  { %s1148_s16 = scalar_lea.vmem %s1299_s21, 2048  ;;  %p1153_p12 = scmp.lt.s32.totalorder %s1299_s21, %s1299_s21 }
  0x1c   :  { %p1149_p11 = scmp.ne.s32.totalorder %s1299_s21, %s1148_s16  ;;  %p1154_p13 = scmp.lt.s32.totalorder %s1148_s16, %s1148_s16 }
  0x1e   :  { %p1155_p0 = por %p1154_p13, %p1153_p12 }
  0x20   :  { %p1156_p1 = pnand %p1155_p0, %p1149_p11 }
  0x22   :  { %1159 = shalt.err (!%p1156_p1)
}
  0x23   :  { %s1260_s1 = smov 64   ;;  %s1261_s17 = smov 4  }
  0x24   :  { %61 = dma.hbm_to_vmem [thread:$0]  %s1418_s3, 2048, %s1299_s21, [#allocation12], %s1260_s1, %s1260_s1, %s1261_s17  }
  0x25   :  { %s1262_s20 = smov [#allocation5]   ;;  %s1263_s23 = smov [#allocation10]  }
  0x26   :  { %s19_s22 = sshll.u32 %s1262_s20, 4  ;;  %s43_s24 = sshll.u32 %s1263_s23, 4  ;;  %s20_s22 = int_to_ptr.vmem [resolvable:$true] %s19_s22  ;;  %s1336_s24 = int_to_ptr.vmem [resolvable:$true] %s43_s24 }
  0x27   :  { %s1160_s27 = scalar_lea.hbm %s1415_s0, 256 }
  0x28   :  { %p1161_p2 = scmp.ne.s32.totalorder %s1415_s0, %s1160_s27  ;;  %p1164_p3 = scmp.lt.u32.totalorder %s1160_s27, %s1415_s0 }
  0x2a   :  { %p1166_p4 = pnand %p1164_p3, %p1161_p2 }
  0x2c   :  { %1169 = shalt.err (!%p1166_p4)
}
  0x2d   :  { %s1170_s3 = scalar_lea.vmem %s20_s22, 256  ;;  %p1175_p6 = scmp.lt.s32.totalorder %s20_s22, %s20_s22 }
  0x2e   :  { %p1171_p5 = scmp.ne.s32.totalorder %s20_s22, %s1170_s3  ;;  %p1176_p7 = scmp.lt.s32.totalorder %s1170_s3, %s1170_s3 }
  0x30   :  { %p1177_p8 = por %p1176_p7, %p1175_p6 }
  0x32   :  { %p1178_p9 = pnand %p1177_p8, %p1171_p5 }
  0x34   :  { %1181 = shalt.err (!%p1178_p9)
}
  0x35   :  { %25 = dma.hbm_to_vmem [thread:$0]  %s1415_s0, 256, %s20_s22, [#allocation6], %s1258_s30, %s1258_s30, %s1259_s6  }
  0x36   :  { %s1182_s12 = scalar_lea.hbm %s1417_s2, 4096 }
  0x37   :  { %p1183_p10 = scmp.ne.s32.totalorder %s1417_s2, %s1182_s12  ;;  %p1186_p11 = scmp.lt.u32.totalorder %s1182_s12, %s1417_s2 }
  0x39   :  { %p1188_p12 = pnand %p1186_p11, %p1183_p10 }
  0x3b   :  { %1191 = shalt.err (!%p1188_p12)
}
  0x3c   :  { %s1192_s18 = scalar_lea.vmem %s1336_s24, 4096  ;;  %p1197_p0 = scmp.lt.s32.totalorder %s1336_s24, %s1336_s24 }
  0x3d   :  { %p1193_p13 = scmp.ne.s32.totalorder %s1336_s24, %s1192_s18  ;;  %p1198_p1 = scmp.lt.s32.totalorder %s1192_s18, %s1192_s18 }
  0x3f   :  { %p1199_p2 = por %p1198_p1, %p1197_p0 }
  0x41   :  { %p1200_p3 = pnand %p1199_p2, %p1193_p13 }
  0x43   :  { %1203 = shalt.err (!%p1200_p3)
}
  0x44   :  { %49 = dma.hbm_to_vmem [thread:$0]  %s1417_s2, 4096, %s1336_s24, [#allocation9], %s1258_s30, %s1258_s30, %s1259_s6  }
  0x45   :  { %s1264_s20 = smov [#allocation13]   ;;  %s1204_s26 = scalar_lea.hbm %s1419_s4, 1024 }
  0x46   :  { %s67_s22 = sshll.u32 %s1264_s20, 4  ;;  %p1205_p4 = scmp.ne.s32.totalorder %s1419_s4, %s1204_s26  ;;  %s68_s22 = int_to_ptr.vmem [resolvable:$true] %s67_s22 }
  0x47   :  { %p1208_p5 = scmp.lt.u32.totalorder %s1204_s26, %s1419_s4 }
  0x49   :  { %p1210_p6 = pnand %p1208_p5, %p1205_p4 }
  0x4b   :  { %1213 = shalt.err (!%p1210_p6)
}
  0x4c   :  { %s1214_s8 = scalar_lea.vmem %s68_s22, 1024  ;;  %p1219_p8 = scmp.lt.s32.totalorder %s68_s22, %s68_s22 }
  0x4d   :  { %p1215_p7 = scmp.ne.s32.totalorder %s68_s22, %s1214_s8  ;;  %p1220_p9 = scmp.lt.s32.totalorder %s1214_s8, %s1214_s8 }
  0x4f   :  { %p1221_p10 = por %p1220_p9, %p1219_p8 }
  0x51   :  { %p1222_p11 = pnand %p1221_p10, %p1215_p7 }
  0x53   :  { %1225 = shalt.err (!%p1222_p11)
}
  0x54   :  { %73 = dma.hbm_to_vmem [thread:$0]  %s1419_s4, 1024, %s68_s22, [#allocation12], %s1260_s1, %s1260_s1, %s1261_s17  }
  0x55   :  { %1248 = dma.done.wait [#allocation6], 256  }
  0x56   :  { %1249 = vsyncadd [#allocation6], 4294967040 }
  0x57   :  { %1250 = dma.done.wait [#allocation9], 6144  }
  0x58   :  { %1251 = vsyncadd [#allocation9], 4294961152 }
  0x59   :  { %1252 = dma.done.wait [#allocation12], 3072  }
  0x5a   :  { %1253 = vsyncadd [#allocation12], 4294964224  ;;  %v1265_v0 = vmov 0   ;;  %v1004_v1 = vld [vmem:[#allocation8 + $0x4] ss:$8 sps:$4 sm:$0xff]   ;;  %v94_v26 = vld [vmem:[#allocation5] sm:$0xff] }
  0x5b   :  { %225 = vmatprep.mubr.bf16.mxu0 %v1265_v0  ;;  %371 = vmatprep.mubr.bf16.mxu1 %v1265_v0  ;;  %v1006_v2 = vld [vmem:[#allocation8] ss:$8 sps:$4 sm:$0xff]   ;;  %v1007_v3 = vld [vmem:[#allocation8 + $0x14] ss:$8 sps:$4 sm:$0xff]   ;;  %v1009_v4 = vld [vmem:[#allocation8 + $0x10] ss:$8 sps:$4 sm:$0xff]  }
  0x5c   :  { %193 = vmatprep.subr.bf16.mxu0 %v1004_v1  ;;  %v1010_v5 = vld [vmem:[#allocation8 + $0x24] ss:$8 sps:$4 sm:$0xff]   ;;  %v1012_v6 = vld [vmem:[#allocation8 + $0x20] ss:$8 sps:$4 sm:$0xff]   ;;  %v1013_v7 = vld [vmem:[#allocation8 + $0x34] ss:$8 sps:$4 sm:$0xff]  }
  0x5d   :  { %194 = vmatpush1.bf16.msra.mxu0 %v1006_v2  ;;  %v1015_v8 = vld [vmem:[#allocation8 + $0x30] ss:$8 sps:$4 sm:$0xff]   ;;  %v1016_v9 = vld [vmem:[#allocation8 + $0x44] ss:$8 sps:$4 sm:$0xff]   ;;  %v1030_v11 = vld [vmem:[#allocation10] ss:$8 sps:$4 sm:$0xff]  }
  0x5e   :  { %195 = vmatprep.subr.bf16.mxu0 %v1007_v3  ;;  %v1028_v10 = vld [vmem:[#allocation10 + $0x4] ss:$8 sps:$4 sm:$0xff]   ;;  %v1018_v12 = vld [vmem:[#allocation8 + $0x40] ss:$8 sps:$4 sm:$0xff]   ;;  %v1034_v13 = vld [vmem:[#allocation10 + $0x14] ss:$8 sps:$4 sm:$0xff]  }
  0x5f   :  { %339 = vmatprep.subr.bf16.mxu1 %v1028_v10  ;;  %v1036_v14 = vld [vmem:[#allocation10 + $0x10] ss:$8 sps:$4 sm:$0xff]   ;;  %v1019_v15 = vld [vmem:[#allocation8 + $0x54] ss:$8 sps:$4 sm:$0xff]   ;;  %v1040_v16 = vld [vmem:[#allocation10 + $0x24] ss:$8 sps:$4 sm:$0xff]  }
  0x60   :  { %340 = vmatpush1.bf16.msra.mxu1 %v1030_v11  ;;  %v1021_v17 = vld [vmem:[#allocation8 + $0x50] ss:$8 sps:$4 sm:$0xff]   ;;  %v1042_v18 = vld [vmem:[#allocation10 + $0x20] ss:$8 sps:$4 sm:$0xff]   ;;  %v1022_v19 = vld [vmem:[#allocation8 + $0x64] ss:$8 sps:$4 sm:$0xff]  }
  0x61   :  { %196 = vmatpush1.bf16.msra.mxu0 %v1009_v4  ;;  %341 = vmatprep.subr.bf16.mxu1 %v1034_v13  ;;  %v1046_v20 = vld [vmem:[#allocation10 + $0x34] ss:$8 sps:$4 sm:$0xff]   ;;  %v1024_v21 = vld [vmem:[#allocation8 + $0x60] ss:$8 sps:$4 sm:$0xff]   ;;  %v1048_v22 = vld [vmem:[#allocation10 + $0x30] ss:$8 sps:$4 sm:$0xff]  }
  0x62   :  { %197 = vmatprep.subr.bf16.mxu0 %v1010_v5  ;;  %v1025_v23 = vld [vmem:[#allocation8 + $0x74] ss:$8 sps:$4 sm:$0xff]   ;;  %v1052_v24 = vld [vmem:[#allocation10 + $0x44] ss:$8 sps:$4 sm:$0xff]   ;;  %v1027_v25 = vld [vmem:[#allocation8 + $0x70] ss:$8 sps:$4 sm:$0xff]  }
  0x63   :  { %v95_v27 = vld [vmem:[#allocation5 + $0x8] sm:$0xff]  ;;  %v1054_v28 = vld [vmem:[#allocation10 + $0x40] ss:$8 sps:$4 sm:$0xff]   ;;  %v1033_v29 = vld [vmem:[#allocation10 + $0x84] ss:$8 sps:$4 sm:$0xff]   ;;  %v1266_v11 = vmov 0.0  }
  0x64   :  { %342 = vmatpush1.bf16.msra.mxu1 %v1036_v14  ;;  %v1058_v30 = vld [vmem:[#allocation10 + $0x54] ss:$8 sps:$4 sm:$0xff]   ;;  %v1031_v31 = vld [vmem:[#allocation10 + $0x80] ss:$8 sps:$4 sm:$0xff]   ;;  %v1060_v32 = vld [vmem:[#allocation10 + $0x50] ss:$8 sps:$4 sm:$0xff]   ;;  %v96_v33 = vpack.c.bf16 %v95_v27, %v94_v26 }
  0x65   :  { %198 = vmatpush1.bf16.msra.mxu0 %v1012_v6  ;;  %343 = vmatprep.subr.bf16.mxu1 %v1040_v16  ;;  %v1039_v34 = vld [vmem:[#allocation10 + $0x94] ss:$8 sps:$4 sm:$0xff]   ;;  %v1064_v35 = vld [vmem:[#allocation10 + $0x64] ss:$8 sps:$4 sm:$0xff]   ;;  %v1037_v36 = vld [vmem:[#allocation10 + $0x90] ss:$8 sps:$4 sm:$0xff]  }
  0x66   :  { %199 = vmatprep.subr.bf16.mxu0 %v1013_v7  ;;  %v1066_v37 = vld [vmem:[#allocation10 + $0x60] ss:$8 sps:$4 sm:$0xff]   ;;  %v1045_v38 = vld [vmem:[#allocation10 + $0xa4] ss:$8 sps:$4 sm:$0xff]   ;;  %v1051_v40 = vld [vmem:[#allocation10 + $0xb4] ss:$8 sps:$4 sm:$0xff]  }
  0x67   :  { %v1043_v39 = vld [vmem:[#allocation10 + $0xa0] ss:$8 sps:$4 sm:$0xff]   ;;  %v1049_v41 = vld [vmem:[#allocation10 + $0xb0] ss:$8 sps:$4 sm:$0xff]   ;;  %v1057_v42 = vld [vmem:[#allocation10 + $0xc4] ss:$8 sps:$4 sm:$0xff]  }
  0x68   :  { %344 = vmatpush1.bf16.msra.mxu1 %v1042_v18  ;;  %v1055_v43 = vld [vmem:[#allocation10 + $0xc0] ss:$8 sps:$4 sm:$0xff]   ;;  %v1063_v44 = vld [vmem:[#allocation10 + $0xd4] ss:$8 sps:$4 sm:$0xff]   ;;  %v1061_v45 = vld [vmem:[#allocation10 + $0xd0] ss:$8 sps:$4 sm:$0xff]  }
  0x69   :  { %200 = vmatpush1.bf16.msra.mxu0 %v1015_v8  ;;  %345 = vmatprep.subr.bf16.mxu1 %v1046_v20  ;;  %v1069_v46 = vld [vmem:[#allocation10 + $0xe4] ss:$8 sps:$4 sm:$0xff]   ;;  %v1067_v47 = vld [vmem:[#allocation10 + $0xe0] ss:$8 sps:$4 sm:$0xff]   ;;  %v1070_v48 = vld [vmem:[#allocation10 + $0x74] ss:$8 sps:$4 sm:$0xff]  }
  0x6a   :  { %201 = vmatprep.subr.bf16.mxu0 %v1016_v9  ;;  %v1072_v49 = vld [vmem:[#allocation10 + $0x70] ss:$8 sps:$4 sm:$0xff]   ;;  %v1075_v50 = vld [vmem:[#allocation10 + $0xf4] ss:$8 sps:$4 sm:$0xff]   ;;  %v1076_v58 = vld [vmem:[#allocation11 + $0x40] sm:$0xff]   ;;  %vm1267_vm0 = vmmov 0  }
  0x6b   :  { %v1073_v51 = vld [vmem:[#allocation10 + $0xf0] ss:$8 sps:$4 sm:$0xff]   ;;  %v1077_v59 = vld [vmem:[#allocation11] sm:$0xff]   ;;  %v1078_v60 = vld [vmem:[#allocation11 + $0x48] sm:$0xff]   ;;  %s1268_s4 = smov [#allocation14]  }
  0x6c   :  { %346 = vmatpush1.bf16.msra.mxu1 %v1048_v22  ;;  %v1079_v61 = vld [vmem:[#allocation11 + $0x8] sm:$0xff]   ;;  %v1080_v62 = vld [vmem:[#allocation11 + $0x50] sm:$0xff]   ;;  %v1083_v1 = vld [vmem:[#allocation11 + $0x18] sm:$0xff]   ;;  %s850_s1 = sshll.u32 %s1268_s4, 4  ;;  %s851_s1 = int_to_ptr.vmem [resolvable:$true] %s850_s1 }
  0x6d   :  { %202 = vmatpush1.bf16.msra.mxu0 %v1018_v12  ;;  %347 = vmatprep.subr.bf16.mxu1 %v1052_v24  ;;  %v1081_v63 = vld [vmem:[#allocation11 + $0x10] sm:$0xff]   ;;  %v1084_v2 = vld [vmem:[#allocation11 + $0x60] sm:$0xff]   ;;  %v1086_v4 = vld [vmem:[#allocation11 + $0x68] sm:$0xff]   ;;  %s1226_s17 = scalar_lea.vmem %s851_s1, 256  ;;  %p1231_p13 = scmp.lt.s32.totalorder %s851_s1, %s851_s1 }
  0x6e   :  { %203 = vmatprep.subr.bf16.mxu0 %v1019_v15  ;;  %v1085_v3 = vld [vmem:[#allocation11 + $0x20] sm:$0xff]   ;;  %v1087_v5 = vld [vmem:[#allocation11 + $0x28] sm:$0xff]   ;;  %v1088_v6 = vld [vmem:[#allocation11 + $0x70] sm:$0xff]   ;;  %p1227_p12 = scmp.ne.s32.totalorder %s851_s1, %s1226_s17  ;;  %p1232_p0 = scmp.lt.s32.totalorder %s1226_s17, %s1226_s17 }
  0x6f   :  { %v1089_v7 = vld [vmem:[#allocation11 + $0x30] sm:$0xff]   ;;  %v1090_v8 = vld [vmem:[#allocation11 + $0x78] sm:$0xff]   ;;  %v1092_v10 = vld [vmem:[#allocation13] sm:$0xff]  }
  0x70   :  { %348 = vmatpush1.bf16.msra.mxu1 %v1054_v28  ;;  %v1091_v9 = vld [vmem:[#allocation11 + $0x38] sm:$0xff]   ;;  %v1093_v12 = vld [vmem:[#allocation13 + $0x8] sm:$0xff]   ;;  %v1094_v13 = vld [vmem:[#allocation13 + $0x10] sm:$0xff]   ;;  %p1233_p1 = por %p1232_p0, %p1231_p13 }
  0x71   :  { %204 = vmatpush1.bf16.msra.mxu0 %v1021_v17  ;;  %349 = vmatprep.subr.bf16.mxu1 %v1058_v30  ;;  %v1095_v14 = vld [vmem:[#allocation13 + $0x18] sm:$0xff]   ;;  %v1096_v15 = vld [vmem:[#allocation13 + $0x20] sm:$0xff]   ;;  %v1097_v16 = vld [vmem:[#allocation13 + $0x28] sm:$0xff]  }
  0x72   :  { %205 = vmatprep.subr.bf16.mxu0 %v1022_v19  ;;  %p1234_p2 = pnand %p1233_p1, %p1227_p12 }
  0x74   :  { %350 = vmatpush1.bf16.msra.mxu1 %v1060_v32 }
  0x75   :  { %206 = vmatpush1.bf16.msra.mxu0 %v1024_v21  ;;  %351 = vmatprep.subr.bf16.mxu1 %v1064_v35 }
  0x76   :  { %207 = vmatprep.subr.bf16.mxu0 %v1025_v23 }
  0x78   :  { %352 = vmatpush1.bf16.msra.mxu1 %v1066_v37 }
  0x79   :  { %208 = vmatpush1.bf16.msra.mxu0 %v1027_v25  ;;  %353 = vmatprep.subr.bf16.mxu1 %v1070_v48 }
  0x7a   :  { %480 = vmatprep.subr.bf16.mxu0 %v1033_v29 }
  0x7c   :  { %226 = vmatmul.mubr.bf16.vlgmr.msra.gmra.mrb[0].mxu0 %v96_v33  ;;  %354 = vmatpush1.bf16.msra.mxu1 %v1072_v49 }
  0x7d   :  { %481 = vmatpush1.bf16.msra.mxu0 %v1031_v31  ;;  %512 = vmatprep.mubr.bf16.mxu0 %v1265_v0  ;;  %v1082_v0 = vld [vmem:[#allocation11 + $0x58] sm:$0xff]  }
  0x7e   :  { %482 = vmatprep.subr.bf16.mxu0 %v1039_v34  ;;  %940 = vmatprep.subr.bf16.mxu1 %v1076_v58 }
  0x81   :  { %483 = vmatpush1.bf16.msra.mxu0 %v1037_v36 }
  0x82   :  { %484 = vmatprep.subr.bf16.mxu0 %v1045_v38 }
  0x85   :  { %485 = vmatpush1.bf16.msra.mxu0 %v1043_v39 }
  0x86   :  { %486 = vmatprep.subr.bf16.mxu0 %v1051_v40 }
  0x89   :  { %487 = vmatpush1.bf16.msra.mxu0 %v1049_v41 }
  0x8a   :  { %488 = vmatprep.subr.bf16.mxu0 %v1057_v42 }
  0x8d   :  { %489 = vmatpush1.bf16.msra.mxu0 %v1055_v43 }
  0x8e   :  { %490 = vmatprep.subr.bf16.mxu0 %v1063_v44 }
  0x91   :  { %491 = vmatpush1.bf16.msra.mxu0 %v1061_v45 }
  0x92   :  { %492 = vmatprep.subr.bf16.mxu0 %v1069_v46 }
  0x95   :  { %493 = vmatpush1.bf16.msra.mxu0 %v1067_v47 }
  0x96   :  { %494 = vmatprep.subr.bf16.mxu0 %v1075_v50 }
  0x99   :  { %495 = vmatpush1.bf16.msra.mxu0 %v1073_v51  ;;  %v1098_v51 = vld [vmem:[#allocation13 + $0x30] sm:$0xff]  }
  0x9a   :  { %971 = vmatprep.subr.bf16.mxu0 %v1266_v11 }
 0x14f   :  { %v227_v52 = vpop.f32.mrb[0].mxu0 }
 0x150   :  { %v229_v53 = vpop.f32.mrb[1].mxu0 }
 0x151   :  { %v231_v54 = vpop.f32.mrb[2].mxu0 }
 0x152   :  { %v236_v55 = vpack.c.bf16 %v231_v54, %v227_v52  ;;  %v233_v56 = vpop.f32.mrb[3].mxu0  ;;  %v1099_v52 = vld [vmem:[#allocation13 + $0x38] sm:$0xff]  }
 0x153   :  { %v238_v57 = vpack.c.bf16 %v233_v56, %v229_v53 }
 0x154   :  { %372 = vmatmul.mubr.bf16.vlgmr.msra.gmra.mrb[0].mxu1 %v236_v55 }
 0x155   :  { %513 = vmatmul.mubr.bf16.vlgmr.msra.gmra.mrb[4].mxu0 %v238_v57  ;;  %941 = vmatpush3.bf16.msra.mxu1 %v1077_v59 }
 0x156   :  { %942 = vmatprep.subr.bf16.mxu1 %v1078_v60  ;;  %972 = vmatpush3.bf16.msra.mxu0 %v1092_v10 }
 0x157   :  { %973 = vmatprep.subr.bf16.mxu0 %v1266_v11  ;;  %987 = vmatprep.mubr.msk.bf16.mxu0 %vm1267_vm0, %v1266_v11 }
 0x159   :  { %943 = vmatpush3.bf16.msra.mxu1 %v1079_v61 }
 0x15a   :  { %944 = vmatprep.subr.bf16.mxu1 %v1080_v62  ;;  %974 = vmatpush3.bf16.msra.mxu0 %v1093_v12 }
 0x15b   :  { %975 = vmatprep.subr.bf16.mxu0 %v1266_v11 }
 0x15d   :  { %945 = vmatpush3.bf16.msra.mxu1 %v1081_v63 }
 0x15e   :  { %946 = vmatprep.subr.bf16.mxu1 %v1082_v0  ;;  %976 = vmatpush3.bf16.msra.mxu0 %v1094_v13 }
 0x15f   :  { %977 = vmatprep.subr.bf16.mxu0 %v1266_v11 }
 0x161   :  { %947 = vmatpush3.bf16.msra.mxu1 %v1083_v1 }
 0x162   :  { %948 = vmatprep.subr.bf16.mxu1 %v1084_v2  ;;  %978 = vmatpush3.bf16.msra.mxu0 %v1095_v14 }
 0x163   :  { %979 = vmatprep.subr.bf16.mxu0 %v1266_v11 }
 0x165   :  { %949 = vmatpush3.bf16.msra.mxu1 %v1085_v3 }
 0x166   :  { %950 = vmatprep.subr.bf16.mxu1 %v1086_v4  ;;  %980 = vmatpush3.bf16.msra.mxu0 %v1096_v15 }
 0x167   :  { %981 = vmatprep.subr.bf16.mxu0 %v1266_v11 }
 0x169   :  { %951 = vmatpush3.bf16.msra.mxu1 %v1087_v5 }
 0x16a   :  { %952 = vmatprep.subr.bf16.mxu1 %v1088_v6  ;;  %982 = vmatpush3.bf16.msra.mxu0 %v1097_v16 }
 0x16b   :  { %983 = vmatprep.subr.bf16.mxu0 %v1266_v11 }
 0x16d   :  { %953 = vmatpush3.bf16.msra.mxu1 %v1089_v7 }
 0x16e   :  { %954 = vmatprep.subr.bf16.mxu1 %v1090_v8  ;;  %984 = vmatpush3.bf16.msra.mxu0 %v1098_v51 }
 0x16f   :  { %985 = vmatprep.subr.bf16.mxu0 %v1266_v11 }
 0x171   :  { %955 = vmatpush3.bf16.msra.mxu1 %v1091_v9 }
 0x172   :  { %986 = vmatpush3.bf16.msra.mxu0 %v1099_v52 }
 0x227   :  { %v373_v17 = vpop.f32.mrb[0].mxu1 }
 0x228   :  { %v912_v18 = vmul.f32 -1.442695, %v373_v17  ;;  %v375_v19 = vpop.f32.mrb[1].mxu1  ;;  %v514_v20 = vpop.f32.mrb[4].mxu0 }
 0x229   :  { %v913_v21 = vmul.f32 -1.442695, %v375_v19  ;;  %v377_v22 = vpop.f32.mrb[2].mxu1  ;;  %v516_v23 = vpop.f32.mrb[5].mxu0 }
 0x22a   :  { %1100 = vpow2.f32 %v912_v18  ;;  %v914_v24 = vmul.f32 -1.442695, %v377_v22  ;;  %v379_v25 = vpop.f32.mrb[3].mxu1  ;;  %v518_v26 = vpop.f32.mrb[6].mxu0 }
 0x22b   :  { %1102 = vpow2.f32 %v913_v21  ;;  %v915_v27 = vmul.f32 -1.442695, %v379_v25  ;;  %v520_v28 = vpop.f32.mrb[7].mxu0 }
 0x22c   :  { %1104 = vpow2.f32 %v914_v24 }
 0x22d   :  { %1106 = vpow2.f32 %v915_v27 }
 0x234   :  { %v1101_v29 = vpop.eup %1100 }
 0x235   :  { %v1103_v30 = vpop.eup %1102  ;;  %v535_v31 = vadd.f32 1.0, %v1101_v29 }
 0x236   :  { %v1105_v32 = vpop.eup %1104  ;;  %v536_v33 = vadd.f32 1.0, %v1103_v30 }
 0x237   :  { %v1107_v34 = vpop.eup %1106  ;;  %1108 = vrcp.f32 %v535_v31  ;;  %v537_v35 = vadd.f32 1.0, %v1105_v32 }
 0x238   :  { %1110 = vrcp.f32 %v536_v33  ;;  %v538_v36 = vadd.f32 1.0, %v1107_v34 }
 0x239   :  { %1112 = vrcp.f32 %v537_v35 }
 0x23a   :  { %1114 = vrcp.f32 %v538_v36 }
 0x241   :  { %v1109_v37 = vpop.eup %1108 }
 0x242   :  { %v1111_v38 = vpop.eup %1110  ;;  %v547_v39 = vmul.f32 %v1109_v37, %v373_v17 }
 0x243   :  { %v1113_v40 = vpop.eup %1112  ;;  %v548_v41 = vmul.f32 %v1111_v38, %v375_v19 }
 0x244   :  { %v1115_v42 = vpop.eup %1114  ;;  %v551_v43 = vmul.f32 %v547_v39, %v514_v20  ;;  %v549_v44 = vmul.f32 %v1113_v40, %v377_v22 }
 0x245   :  { %v552_v45 = vmul.f32 %v548_v41, %v516_v23  ;;  %v550_v46 = vmul.f32 %v1115_v42, %v379_v25 }
 0x246   :  { %v553_v47 = vmul.f32 %v549_v44, %v518_v26 }
 0x247   :  { %v554_v48 = vmul.f32 %v550_v46, %v520_v28 }
 0x248   :  { %v557_v49 = vpack.c.bf16 %v553_v47, %v551_v43 }
 0x249   :  { %v558_v50 = vpack.c.bf16 %v554_v48, %v552_v45 }
 0x24b   :  { %719 = vmatprep.mubr.bf16.mxu1 %v558_v50 }
 0x24c   :  { %720 = vmatmul.mubr.bf16.vlgmr.msra.gmra.mrb[4].mxu1 %v557_v49 }
 0x31f   :  { %v956_v53 = vpop.f32.mrb[4].mxu1 }
 0x320   :  { %v957_v54 = vpop.f32.mrb[5].mxu1 }
 0x321   :  { %v958_v55 = vadd.f32 %v957_v54, %v956_v53  ;;  %v959_v56 = vpop.f32.mrb[6].mxu1 }
 0x322   :  { %v960_v57 = vpop.f32.mrb[7].mxu1 }
 0x323   :  { %v961_v58 = vadd.f32 %v960_v57, %v959_v56 }
 0x325   :  { %v737_v59 = vpack.c.bf16 %v961_v58, %v958_v55 }
 0x327   :  { %988 = vmatmul.mubr.bf16.vlgmr.msra.gmra.mrb[8].mxu0 %v737_v59 }
 0x3fa   :  { %v836_v60 = vpop.f32.mrb[8].mxu0 }
 0x3fb   :  { %843 = vst [vmem:[#allocation14] sm:$0xff] %v836_v60  ;;  %v989_v61 = vpop.f32.mrb[9].mxu0 }
 0x3fc   :  { %v839_v62 = vpop.f32.mrb[10].mxu0 }
 0x3fd   :  { %844 = vst [vmem:[#allocation14 + $0x8] sm:$0xff] %v839_v62  ;;  %v990_v63 = vpop.f32.mrb[11].mxu0 }
 0x3fe   :  { %1237 = shalt.err (!%p1234_p2)
}
 0x3ff   :  { %s1238_s9 = scalar_lea.hbm %s1420_s5, 256 }
 0x400   :  { %p1239_p3 = scmp.ne.s32.totalorder %s1420_s5, %s1238_s9  ;;  %p1242_p4 = scmp.lt.u32.totalorder %s1238_s9, %s1420_s5 }
 0x402   :  { %p1244_p5 = pnand %p1242_p4, %p1239_p3 }
 0x404   :  { %1247 = shalt.err (!%p1244_p5)
}
 0x405   :  { %856 = dma.vmem_to_hbm [thread:$0]  %s851_s1, 256, %s1420_s5, [#allocation7], %s1258_s30, %s1258_s30, %s1259_s6  }
 0x406   :  { %1254 = dma.done.wait [#allocation7], 256  }
 0x407   :  { %1255 = vsyncadd [#allocation7], 4294967040 }
 0x408   :  { %860 = vsyncpa [#allocation6], 1 }
 0x409   :  { %861 = vsyncpa [#allocation9], 1 }
 0x40a   :  { %862 = vsyncpa [#allocation12], 1 }
 0x40b   :  { %863 = vsyncpa [#allocation7], 1 }

// kernel: tpu_custom_call.1
= control target key start
LH: loop header
LB: loop body
LE: loop exit
PB: predicated region body
PF: predicated region fallthrough
CT: control target
= control target key end

     0   :  { %10 = vsyncpa [#allocation6], 0  ;;  %s1415_s0 = inlined_call_operand.hbm [shape: f32[16,128], index: 0, kind: input, shape index: {}]   ;;  %s1416_s1 = inlined_call_operand.hbm [shape: bf16[128,256], index: 1, kind: input, shape index: {}]   ;;  %s1417_s2 = inlined_call_operand.hbm [shape: bf16[2,128,256], index: 2, kind: input, shape index: {}]   ;;  %s1418_s3 = inlined_call_operand.hbm [shape: bf16[256,128], index: 3, kind: input, shape index: {}]   ;;  %s1419_s4 = inlined_call_operand.hbm [shape: bf16[128,128], index: 4, kind: input, shape index: {}]   ;;  %s1420_s5 = inlined_call_operand.hbm [shape: f32[16,128], index: 5, kind: output, shape index: {}]  }
   0x1   :  { %11 = vsyncpa [#allocation9], 0 }
   0x2   :  { %12 = vsyncpa [#allocation12], 0 }
   0x3   :  { %13 = vsyncpa [#allocation7], 0  ;;  %s1256_s18 = smov [#allocation8]   ;;  %s1257_s20 = smov [#allocation11]  }
   0x4   :  { %s31_s19 = sshll.u32 %s1256_s18, 4  ;;  %s55_s21 = sshll.u32 %s1257_s20, 4  ;;  %s32_s19 = int_to_ptr.vmem [resolvable:$true] %s31_s19  ;;  %s1299_s21 = int_to_ptr.vmem [resolvable:$true] %s55_s21 }
   0x5   :  { %s1116_s24 = scalar_lea.hbm %s1416_s1, 2048 }
   0x6   :  { %p1117_p0 = scmp.ne.s32.totalorder %s1416_s1, %s1116_s24  ;;  %p1120_p1 = scmp.lt.u32.totalorder %s1116_s24, %s1416_s1 }
   0x8   :  { %p1122_p2 = pnand %p1120_p1, %p1117_p0 }
   0xa   :  { %1125 = shalt.err (!%p1122_p2)
}
   0xb   :  { %s1126_s29 = scalar_lea.vmem %s32_s19, 2048  ;;  %p1131_p4 = scmp.lt.s32.totalorder %s32_s19, %s32_s19 }
   0xc   :  { %p1127_p3 = scmp.ne.s32.totalorder %s32_s19, %s1126_s29  ;;  %p1132_p5 = scmp.lt.s32.totalorder %s1126_s29, %s1126_s29 }
   0xe   :  { %p1133_p6 = por %p1132_p5, %p1131_p4 }
  0x10   :  { %p1134_p7 = pnand %p1133_p6, %p1127_p3 }
  0x12   :  { %1137 = shalt.err (!%p1134_p7)
}
  0x13   :  { %s1258_s30 = smov 128   ;;  %s1259_s6 = smov 8  }
  0x14   :  { %37 = dma.hbm_to_vmem [thread:$0]  %s1416_s1, 2048, %s32_s19, [#allocation9], %s1258_s30, %s1258_s30, %s1259_s6  }
  0x15   :  { %s1138_s11 = scalar_lea.hbm %s1418_s3, 2048 }
  0x16   :  { %p1139_p8 = scmp.ne.s32.totalorder %s1418_s3, %s1138_s11  ;;  %p1142_p9 = scmp.lt.u32.totalorder %s1138_s11, %s1418_s3 }
  0x18   :  { %p1144_p10 = pnand %p1142_p9, %p1139_p8 }
  0x1a   :  { %1147 = shalt.err (!%p1144_p10)
}
  0x1b   :  { %s1148_s16 = scalar_lea.vmem %s1299_s21, 2048  ;;  %p1153_p12 = scmp.lt.s32.totalorder %s1299_s21, %s1299_s21 }
  0x1c   :  { %p1149_p11 = scmp.ne.s32.totalorder %s1299_s21, %s1148_s16  ;;  %p1154_p13 = scmp.lt.s32.totalorder %s1148_s16, %s1148_s16 }
  0x1e   :  { %p1155_p0 = por %p1154_p13, %p1153_p12 }
  0x20   :  { %p1156_p1 = pnand %p1155_p0, %p1149_p11 }
  0x22   :  { %1159 = shalt.err (!%p1156_p1)
}
  0x23   :  { %s1260_s1 = smov 64   ;;  %s1261_s17 = smov 4  }
  0x24   :  { %61 = dma.hbm_to_vmem [thread:$0]  %s1418_s3, 2048, %s1299_s21, [#allocation12], %s1260_s1, %s1260_s1, %s1261_s17  }
  0x25   :  { %s1262_s20 = smov [#allocation5]   ;;  %s1263_s23 = smov [#allocation10]  }
  0x26   :  { %s19_s22 = sshll.u32 %s1262_s20, 4  ;;  %s43_s24 = sshll.u32 %s1263_s23, 4  ;;  %s20_s22 = int_to_ptr.vmem [resolvable:$true] %s19_s22  ;;  %s1336_s24 = int_to_ptr.vmem [resolvable:$true] %s43_s24 }
  0x27   :  { %s1160_s27 = scalar_lea.hbm %s1415_s0, 256 }
  0x28   :  { %p1161_p2 = scmp.ne.s32.totalorder %s1415_s0, %s1160_s27  ;;  %p1164_p3 = scmp.lt.u32.totalorder %s1160_s27, %s1415_s0 }
  0x2a   :  { %p1166_p4 = pnand %p1164_p3, %p1161_p2 }
  0x2c   :  { %1169 = shalt.err (!%p1166_p4)
}
  0x2d   :  { %s1170_s3 = scalar_lea.vmem %s20_s22, 256  ;;  %p1175_p6 = scmp.lt.s32.totalorder %s20_s22, %s20_s22 }
  0x2e   :  { %p1171_p5 = scmp.ne.s32.totalorder %s20_s22, %s1170_s3  ;;  %p1176_p7 = scmp.lt.s32.totalorder %s1170_s3, %s1170_s3 }
  0x30   :  { %p1177_p8 = por %p1176_p7, %p1175_p6 }
  0x32   :  { %p1178_p9 = pnand %p1177_p8, %p1171_p5 }
  0x34   :  { %1181 = shalt.err (!%p1178_p9)
}
  0x35   :  { %25 = dma.hbm_to_vmem [thread:$0]  %s1415_s0, 256, %s20_s22, [#allocation6], %s1258_s30, %s1258_s30, %s1259_s6  }
  0x36   :  { %s1182_s12 = scalar_lea.hbm %s1417_s2, 4096 }
  0x37   :  { %p1183_p10 = scmp.ne.s32.totalorder %s1417_s2, %s1182_s12  ;;  %p1186_p11 = scmp.lt.u32.totalorder %s1182_s12, %s1417_s2 }
  0x39   :  { %p1188_p12 = pnand %p1186_p11, %p1183_p10 }
  0x3b   :  { %1191 = shalt.err (!%p1188_p12)
}
  0x3c   :  { %s1192_s18 = scalar_lea.vmem %s1336_s24, 4096  ;;  %p1197_p0 = scmp.lt.s32.totalorder %s1336_s24, %s1336_s24 }
  0x3d   :  { %p1193_p13 = scmp.ne.s32.totalorder %s1336_s24, %s1192_s18  ;;  %p1198_p1 = scmp.lt.s32.totalorder %s1192_s18, %s1192_s18 }
  0x3f   :  { %p1199_p2 = por %p1198_p1, %p1197_p0 }
  0x41   :  { %p1200_p3 = pnand %p1199_p2, %p1193_p13 }
  0x43   :  { %1203 = shalt.err (!%p1200_p3)
}
  0x44   :  { %49 = dma.hbm_to_vmem [thread:$0]  %s1417_s2, 4096, %s1336_s24, [#allocation9], %s1258_s30, %s1258_s30, %s1259_s6  }
  0x45   :  { %s1264_s20 = smov [#allocation13]   ;;  %s1204_s26 = scalar_lea.hbm %s1419_s4, 1024 }
  0x46   :  { %s67_s22 = sshll.u32 %s1264_s20, 4  ;;  %p1205_p4 = scmp.ne.s32.totalorder %s1419_s4, %s1204_s26  ;;  %s68_s22 = int_to_ptr.vmem [resolvable:$true] %s67_s22 }
  0x47   :  { %p1208_p5 = scmp.lt.u32.totalorder %s1204_s26, %s1419_s4 }
  0x49   :  { %p1210_p6 = pnand %p1208_p5, %p1205_p4 }
  0x4b   :  { %1213 = shalt.err (!%p1210_p6)
}
  0x4c   :  { %s1214_s8 = scalar_lea.vmem %s68_s22, 1024  ;;  %p1219_p8 = scmp.lt.s32.totalorder %s68_s22, %s68_s22 }
  0x4d   :  { %p1215_p7 = scmp.ne.s32.totalorder %s68_s22, %s1214_s8  ;;  %p1220_p9 = scmp.lt.s32.totalorder %s1214_s8, %s1214_s8 }
  0x4f   :  { %p1221_p10 = por %p1220_p9, %p1219_p8 }
  0x51   :  { %p1222_p11 = pnand %p1221_p10, %p1215_p7 }
  0x53   :  { %1225 = shalt.err (!%p1222_p11)
}
  0x54   :  { %73 = dma.hbm_to_vmem [thread:$0]  %s1419_s4, 1024, %s68_s22, [#allocation12], %s1260_s1, %s1260_s1, %s1261_s17  }
  0x55   :  { %1248 = dma.done.wait [#allocation6], 256  }
  0x56   :  { %1249 = vsyncadd [#allocation6], 4294967040 }
  0x57   :  { %1250 = dma.done.wait [#allocation9], 6144  }
  0x58   :  { %1251 = vsyncadd [#allocation9], 4294961152 }
  0x59   :  { %1252 = dma.done.wait [#allocation12], 3072  }
  0x5a   :  { %1253 = vsyncadd [#allocation12], 4294964224  ;;  %v1265_v0 = vmov 0   ;;  %v1004_v1 = vld [vmem:[#allocation8 + $0x4] ss:$8 sps:$4 sm:$0xff]   ;;  %v94_v26 = vld [vmem:[#allocation5] sm:$0xff] }
  0x5b   :  { %225 = vmatprep.mubr.bf16.mxu0 %v1265_v0  ;;  %371 = vmatprep.mubr.bf16.mxu1 %v1265_v0  ;;  %v1006_v2 = vld [vmem:[#allocation8] ss:$8 sps:$4 sm:$0xff]   ;;  %v1007_v3 = vld [vmem:[#allocation8 + $0x14] ss:$8 sps:$4 sm:$0xff]   ;;  %v1009_v4 = vld [vmem:[#allocation8 + $0x10] ss:$8 sps:$4 sm:$0xff]  }
  0x5c   :  { %193 = vmatprep.subr.bf16.mxu0 %v1004_v1  ;;  %v1010_v5 = vld [vmem:[#allocation8 + $0x24] ss:$8 sps:$4 sm:$0xff]   ;;  %v1012_v6 = vld [vmem:[#allocation8 + $0x20] ss:$8 sps:$4 sm:$0xff]   ;;  %v1013_v7 = vld [vmem:[#allocation8 + $0x34] ss:$8 sps:$4 sm:$0xff]  }
  0x5d   :  { %194 = vmatpush1.bf16.msra.mxu0 %v1006_v2  ;;  %v1015_v8 = vld [vmem:[#allocation8 + $0x30] ss:$8 sps:$4 sm:$0xff]   ;;  %v1016_v9 = vld [vmem:[#allocation8 + $0x44] ss:$8 sps:$4 sm:$0xff]   ;;  %v1030_v11 = vld [vmem:[#allocation10] ss:$8 sps:$4 sm:$0xff]  }
  0x5e   :  { %195 = vmatprep.subr.bf16.mxu0 %v1007_v3  ;;  %v1028_v10 = vld [vmem:[#allocation10 + $0x4] ss:$8 sps:$4 sm:$0xff]   ;;  %v1018_v12 = vld [vmem:[#allocation8 + $0x40] ss:$8 sps:$4 sm:$0xff]   ;;  %v1034_v13 = vld [vmem:[#allocation10 + $0x14] ss:$8 sps:$4 sm:$0xff]  }
  0x5f   :  { %339 = vmatprep.subr.bf16.mxu1 %v1028_v10  ;;  %v1036_v14 = vld [vmem:[#allocation10 + $0x10] ss:$8 sps:$4 sm:$0xff]   ;;  %v1019_v15 = vld [vmem:[#allocation8 + $0x54] ss:$8 sps:$4 sm:$0xff]   ;;  %v1040_v16 = vld [vmem:[#allocation10 + $0x24] ss:$8 sps:$4 sm:$0xff]  }
  0x60   :  { %340 = vmatpush1.bf16.msra.mxu1 %v1030_v11  ;;  %v1021_v17 = vld [vmem:[#allocation8 + $0x50] ss:$8 sps:$4 sm:$0xff]   ;;  %v1042_v18 = vld [vmem:[#allocation10 + $0x20] ss:$8 sps:$4 sm:$0xff]   ;;  %v1022_v19 = vld [vmem:[#allocation8 + $0x64] ss:$8 sps:$4 sm:$0xff]  }
  0x61   :  { %196 = vmatpush1.bf16.msra.mxu0 %v1009_v4  ;;  %341 = vmatprep.subr.bf16.mxu1 %v1034_v13  ;;  %v1046_v20 = vld [vmem:[#allocation10 + $0x34] ss:$8 sps:$4 sm:$0xff]   ;;  %v1024_v21 = vld [vmem:[#allocation8 + $0x60] ss:$8 sps:$4 sm:$0xff]   ;;  %v1048_v22 = vld [vmem:[#allocation10 + $0x30] ss:$8 sps:$4 sm:$0xff]  }
  0x62   :  { %197 = vmatprep.subr.bf16.mxu0 %v1010_v5  ;;  %v1025_v23 = vld [vmem:[#allocation8 + $0x74] ss:$8 sps:$4 sm:$0xff]   ;;  %v1052_v24 = vld [vmem:[#allocation10 + $0x44] ss:$8 sps:$4 sm:$0xff]   ;;  %v1027_v25 = vld [vmem:[#allocation8 + $0x70] ss:$8 sps:$4 sm:$0xff]  }
  0x63   :  { %v95_v27 = vld [vmem:[#allocation5 + $0x8] sm:$0xff]  ;;  %v1054_v28 = vld [vmem:[#allocation10 + $0x40] ss:$8 sps:$4 sm:$0xff]   ;;  %v1033_v29 = vld [vmem:[#allocation10 + $0x84] ss:$8 sps:$4 sm:$0xff]   ;;  %v1266_v11 = vmov 0.0  }
  0x64   :  { %342 = vmatpush1.bf16.msra.mxu1 %v1036_v14  ;;  %v1058_v30 = vld [vmem:[#allocation10 + $0x54] ss:$8 sps:$4 sm:$0xff]   ;;  %v1031_v31 = vld [vmem:[#allocation10 + $0x80] ss:$8 sps:$4 sm:$0xff]   ;;  %v1060_v32 = vld [vmem:[#allocation10 + $0x50] ss:$8 sps:$4 sm:$0xff]   ;;  %v96_v33 = vpack.c.bf16 %v95_v27, %v94_v26 }
  0x65   :  { %198 = vmatpush1.bf16.msra.mxu0 %v1012_v6  ;;  %343 = vmatprep.subr.bf16.mxu1 %v1040_v16  ;;  %v1039_v34 = vld [vmem:[#allocation10 + $0x94] ss:$8 sps:$4 sm:$0xff]   ;;  %v1064_v35 = vld [vmem:[#allocation10 + $0x64] ss:$8 sps:$4 sm:$0xff]   ;;  %v1037_v36 = vld [vmem:[#allocation10 + $0x90] ss:$8 sps:$4 sm:$0xff]  }
  0x66   :  { %199 = vmatprep.subr.bf16.mxu0 %v1013_v7  ;;  %v1066_v37 = vld [vmem:[#allocation10 + $0x60] ss:$8 sps:$4 sm:$0xff]   ;;  %v1045_v38 = vld [vmem:[#allocation10 + $0xa4] ss:$8 sps:$4 sm:$0xff]   ;;  %v1051_v40 = vld [vmem:[#allocation10 + $0xb4] ss:$8 sps:$4 sm:$0xff]  }
  0x67   :  { %v1043_v39 = vld [vmem:[#allocation10 + $0xa0] ss:$8 sps:$4 sm:$0xff]   ;;  %v1049_v41 = vld [vmem:[#allocation10 + $0xb0] ss:$8 sps:$4 sm:$0xff]   ;;  %v1057_v42 = vld [vmem:[#allocation10 + $0xc4] ss:$8 sps:$4 sm:$0xff]  }
  0x68   :  { %344 = vmatpush1.bf16.msra.mxu1 %v1042_v18  ;;  %v1055_v43 = vld [vmem:[#allocation10 + $0xc0] ss:$8 sps:$4 sm:$0xff]   ;;  %v1063_v44 = vld [vmem:[#allocation10 + $0xd4] ss:$8 sps:$4 sm:$0xff]   ;;  %v1061_v45 = vld [vmem:[#allocation10 + $0xd0] ss:$8 sps:$4 sm:$0xff]  }
  0x69   :  { %200 = vmatpush1.bf16.msra.mxu0 %v1015_v8  ;;  %345 = vmatprep.subr.bf16.mxu1 %v1046_v20  ;;  %v1069_v46 = vld [vmem:[#allocation10 + $0xe4] ss:$8 sps:$4 sm:$0xff]   ;;  %v1067_v47 = vld [vmem:[#allocation10 + $0xe0] ss:$8 sps:$4 sm:$0xff]   ;;  %v1070_v48 = vld [vmem:[#allocation10 + $0x74] ss:$8 sps:$4 sm:$0xff]  }
  0x6a   :  { %201 = vmatprep.subr.bf16.mxu0 %v1016_v9  ;;  %v1072_v49 = vld [vmem:[#allocation10 + $0x70] ss:$8 sps:$4 sm:$0xff]   ;;  %v1075_v50 = vld [vmem:[#allocation10 + $0xf4] ss:$8 sps:$4 sm:$0xff]   ;;  %v1076_v58 = vld [vmem:[#allocation11 + $0x40] sm:$0xff]   ;;  %vm1267_vm0 = vmmov 0  }
  0x6b   :  { %v1073_v51 = vld [vmem:[#allocation10 + $0xf0] ss:$8 sps:$4 sm:$0xff]   ;;  %v1077_v59 = vld [vmem:[#allocation11] sm:$0xff]   ;;  %v1078_v60 = vld [vmem:[#allocation11 + $0x48] sm:$0xff]   ;;  %s1268_s4 = smov [#allocation14]  }
  0x6c   :  { %346 = vmatpush1.bf16.msra.mxu1 %v1048_v22  ;;  %v1079_v61 = vld [vmem:[#allocation11 + $0x8] sm:$0xff]   ;;  %v1080_v62 = vld [vmem:[#allocation11 + $0x50] sm:$0xff]   ;;  %v1083_v1 = vld [vmem:[#allocation11 + $0x18] sm:$0xff]   ;;  %s850_s1 = sshll.u32 %s1268_s4, 4  ;;  %s851_s1 = int_to_ptr.vmem [resolvable:$true] %s850_s1 }
  0x6d   :  { %202 = vmatpush1.bf16.msra.mxu0 %v1018_v12  ;;  %347 = vmatprep.subr.bf16.mxu1 %v1052_v24  ;;  %v1081_v63 = vld [vmem:[#allocation11 + $0x10] sm:$0xff]   ;;  %v1084_v2 = vld [vmem:[#allocation11 + $0x60] sm:$0xff]   ;;  %v1086_v4 = vld [vmem:[#allocation11 + $0x68] sm:$0xff]   ;;  %s1226_s17 = scalar_lea.vmem %s851_s1, 256  ;;  %p1231_p13 = scmp.lt.s32.totalorder %s851_s1, %s851_s1 }
  0x6e   :  { %203 = vmatprep.subr.bf16.mxu0 %v1019_v15  ;;  %v1085_v3 = vld [vmem:[#allocation11 + $0x20] sm:$0xff]   ;;  %v1087_v5 = vld [vmem:[#allocation11 + $0x28] sm:$0xff]   ;;  %v1088_v6 = vld [vmem:[#allocation11 + $0x70] sm:$0xff]   ;;  %p1227_p12 = scmp.ne.s32.totalorder %s851_s1, %s1226_s17  ;;  %p1232_p0 = scmp.lt.s32.totalorder %s1226_s17, %s1226_s17 }
  0x6f   :  { %v1089_v7 = vld [vmem:[#allocation11 + $0x30] sm:$0xff]   ;;  %v1090_v8 = vld [vmem:[#allocation11 + $0x78] sm:$0xff]   ;;  %v1092_v10 = vld [vmem:[#allocation13] sm:$0xff]  }
  0x70   :  { %348 = vmatpush1.bf16.msra.mxu1 %v1054_v28  ;;  %v1091_v9 = vld [vmem:[#allocation11 + $0x38] sm:$0xff]   ;;  %v1093_v12 = vld [vmem:[#allocation13 + $0x8] sm:$0xff]   ;;  %v1094_v13 = vld [vmem:[#allocation13 + $0x10] sm:$0xff]   ;;  %p1233_p1 = por %p1232_p0, %p1231_p13 }
  0x71   :  { %204 = vmatpush1.bf16.msra.mxu0 %v1021_v17  ;;  %349 = vmatprep.subr.bf16.mxu1 %v1058_v30  ;;  %v1095_v14 = vld [vmem:[#allocation13 + $0x18] sm:$0xff]   ;;  %v1096_v15 = vld [vmem:[#allocation13 + $0x20] sm:$0xff]   ;;  %v1097_v16 = vld [vmem:[#allocation13 + $0x28] sm:$0xff]  }
  0x72   :  { %205 = vmatprep.subr.bf16.mxu0 %v1022_v19  ;;  %p1234_p2 = pnand %p1233_p1, %p1227_p12 }
  0x74   :  { %350 = vmatpush1.bf16.msra.mxu1 %v1060_v32 }
  0x75   :  { %206 = vmatpush1.bf16.msra.mxu0 %v1024_v21  ;;  %351 = vmatprep.subr.bf16.mxu1 %v1064_v35 }
  0x76   :  { %207 = vmatprep.subr.bf16.mxu0 %v1025_v23 }
  0x78   :  { %352 = vmatpush1.bf16.msra.mxu1 %v1066_v37 }
  0x79   :  { %208 = vmatpush1.bf16.msra.mxu0 %v1027_v25  ;;  %353 = vmatprep.subr.bf16.mxu1 %v1070_v48 }
  0x7a   :  { %480 = vmatprep.subr.bf16.mxu0 %v1033_v29 }
  0x7c   :  { %226 = vmatmul.mubr.bf16.vlgmr.msra.gmra.mrb[0].mxu0 %v96_v33  ;;  %354 = vmatpush1.bf16.msra.mxu1 %v1072_v49 }
  0x7d   :  { %481 = vmatpush1.bf16.msra.mxu0 %v1031_v31  ;;  %512 = vmatprep.mubr.bf16.mxu0 %v1265_v0  ;;  %v1082_v0 = vld [vmem:[#allocation11 + $0x58] sm:$0xff]  }
  0x7e   :  { %482 = vmatprep.subr.bf16.mxu0 %v1039_v34  ;;  %940 = vmatprep.subr.bf16.mxu1 %v1076_v58 }
  0x81   :  { %483 = vmatpush1.bf16.msra.mxu0 %v1037_v36 }
  0x82   :  { %484 = vmatprep.subr.bf16.mxu0 %v1045_v38 }
  0x85   :  { %485 = vmatpush1.bf16.msra.mxu0 %v1043_v39 }
  0x86   :  { %486 = vmatprep.subr.bf16.mxu0 %v1051_v40 }
  0x89   :  { %487 = vmatpush1.bf16.msra.mxu0 %v1049_v41 }
  0x8a   :  { %488 = vmatprep.subr.bf16.mxu0 %v1057_v42 }
  0x8d   :  { %489 = vmatpush1.bf16.msra.mxu0 %v1055_v43 }
  0x8e   :  { %490 = vmatprep.subr.bf16.mxu0 %v1063_v44 }
  0x91   :  { %491 = vmatpush1.bf16.msra.mxu0 %v1061_v45 }
  0x92   :  { %492 = vmatprep.subr.bf16.mxu0 %v1069_v46 }
  0x95   :  { %493 = vmatpush1.bf16.msra.mxu0 %v1067_v47 }
  0x96   :  { %494 = vmatprep.subr.bf16.mxu0 %v1075_v50 }
  0x99   :  { %495 = vmatpush1.bf16.msra.mxu0 %v1073_v51  ;;  %v1098_v51 = vld [vmem:[#allocation13 + $0x30] sm:$0xff]  }
  0x9a   :  { %971 = vmatprep.subr.bf16.mxu0 %v1266_v11 }
 0x14f   :  { %v227_v52 = vpop.f32.mrb[0].mxu0 }
 0x150   :  { %v229_v53 = vpop.f32.mrb[1].mxu0 }
 0x151   :  { %v231_v54 = vpop.f32.mrb[2].mxu0 }
 0x152   :  { %v236_v55 = vpack.c.bf16 %v231_v54, %v227_v52  ;;  %v233_v56 = vpop.f32.mrb[3].mxu0  ;;  %v1099_v52 = vld [vmem:[#allocation13 + $0x38] sm:$0xff]  }
 0x153   :  { %v238_v57 = vpack.c.bf16 %v233_v56, %v229_v53 }
 0x154   :  { %372 = vmatmul.mubr.bf16.vlgmr.msra.gmra.mrb[0].mxu1 %v236_v55 }
 0x155   :  { %513 = vmatmul.mubr.bf16.vlgmr.msra.gmra.mrb[4].mxu0 %v238_v57  ;;  %941 = vmatpush3.bf16.msra.mxu1 %v1077_v59 }
 0x156   :  { %942 = vmatprep.subr.bf16.mxu1 %v1078_v60  ;;  %972 = vmatpush3.bf16.msra.mxu0 %v1092_v10 }
 0x157   :  { %973 = vmatprep.subr.bf16.mxu0 %v1266_v11  ;;  %987 = vmatprep.mubr.msk.bf16.mxu0 %vm1267_vm0, %v1266_v11 }
 0x159   :  { %943 = vmatpush3.bf16.msra.mxu1 %v1079_v61 }
 0x15a   :  { %944 = vmatprep.subr.bf16.mxu1 %v1080_v62  ;;  %974 = vmatpush3.bf16.msra.mxu0 %v1093_v12 }
 0x15b   :  { %975 = vmatprep.subr.bf16.mxu0 %v1266_v11 }
 0x15d   :  { %945 = vmatpush3.bf16.msra.mxu1 %v1081_v63 }
 0x15e   :  { %946 = vmatprep.subr.bf16.mxu1 %v1082_v0  ;;  %976 = vmatpush3.bf16.msra.mxu0 %v1094_v13 }
 0x15f   :  { %977 = vmatprep.subr.bf16.mxu0 %v1266_v11 }
 0x161   :  { %947 = vmatpush3.bf16.msra.mxu1 %v1083_v1 }
 0x162   :  { %948 = vmatprep.subr.bf16.mxu1 %v1084_v2  ;;  %978 = vmatpush3.bf16.msra.mxu0 %v1095_v14 }
 0x163   :  { %979 = vmatprep.subr.bf16.mxu0 %v1266_v11 }
 0x165   :  { %949 = vmatpush3.bf16.msra.mxu1 %v1085_v3 }
 0x166   :  { %950 = vmatprep.subr.bf16.mxu1 %v1086_v4  ;;  %980 = vmatpush3.bf16.msra.mxu0 %v1096_v15 }
 0x167   :  { %981 = vmatprep.subr.bf16.mxu0 %v1266_v11 }
 0x169   :  { %951 = vmatpush3.bf16.msra.mxu1 %v1087_v5 }
 0x16a   :  { %952 = vmatprep.subr.bf16.mxu1 %v1088_v6  ;;  %982 = vmatpush3.bf16.msra.mxu0 %v1097_v16 }
 0x16b   :  { %983 = vmatprep.subr.bf16.mxu0 %v1266_v11 }
 0x16d   :  { %953 = vmatpush3.bf16.msra.mxu1 %v1089_v7 }
 0x16e   :  { %954 = vmatprep.subr.bf16.mxu1 %v1090_v8  ;;  %984 = vmatpush3.bf16.msra.mxu0 %v1098_v51 }
 0x16f   :  { %985 = vmatprep.subr.bf16.mxu0 %v1266_v11 }
 0x171   :  { %955 = vmatpush3.bf16.msra.mxu1 %v1091_v9 }
 0x172   :  { %986 = vmatpush3.bf16.msra.mxu0 %v1099_v52 }
 0x227   :  { %v373_v17 = vpop.f32.mrb[0].mxu1 }
 0x228   :  { %v912_v18 = vmul.f32 -1.442695, %v373_v17  ;;  %v375_v19 = vpop.f32.mrb[1].mxu1  ;;  %v514_v20 = vpop.f32.mrb[4].mxu0 }
 0x229   :  { %v913_v21 = vmul.f32 -1.442695, %v375_v19  ;;  %v377_v22 = vpop.f32.mrb[2].mxu1  ;;  %v516_v23 = vpop.f32.mrb[5].mxu0 }
 0x22a   :  { %1100 = vpow2.f32 %v912_v18  ;;  %v914_v24 = vmul.f32 -1.442695, %v377_v22  ;;  %v379_v25 = vpop.f32.mrb[3].mxu1  ;;  %v518_v26 = vpop.f32.mrb[6].mxu0 }
 0x22b   :  { %1102 = vpow2.f32 %v913_v21  ;;  %v915_v27 = vmul.f32 -1.442695, %v379_v25  ;;  %v520_v28 = vpop.f32.mrb[7].mxu0 }
 0x22c   :  { %1104 = vpow2.f32 %v914_v24 }
 0x22d   :  { %1106 = vpow2.f32 %v915_v27 }
 0x234   :  { %v1101_v29 = vpop.eup %1100 }
 0x235   :  { %v1103_v30 = vpop.eup %1102  ;;  %v535_v31 = vadd.f32 1.0, %v1101_v29 }
 0x236   :  { %v1105_v32 = vpop.eup %1104  ;;  %v536_v33 = vadd.f32 1.0, %v1103_v30 }
 0x237   :  { %v1107_v34 = vpop.eup %1106  ;;  %1108 = vrcp.f32 %v535_v31  ;;  %v537_v35 = vadd.f32 1.0, %v1105_v32 }
 0x238   :  { %1110 = vrcp.f32 %v536_v33  ;;  %v538_v36 = vadd.f32 1.0, %v1107_v34 }
 0x239   :  { %1112 = vrcp.f32 %v537_v35 }
 0x23a   :  { %1114 = vrcp.f32 %v538_v36 }
 0x241   :  { %v1109_v37 = vpop.eup %1108 }
 0x242   :  { %v1111_v38 = vpop.eup %1110  ;;  %v547_v39 = vmul.f32 %v1109_v37, %v373_v17 }
 0x243   :  { %v1113_v40 = vpop.eup %1112  ;;  %v548_v41 = vmul.f32 %v1111_v38, %v375_v19 }
 0x244   :  { %v1115_v42 = vpop.eup %1114  ;;  %v551_v43 = vmul.f32 %v547_v39, %v514_v20  ;;  %v549_v44 = vmul.f32 %v1113_v40, %v377_v22 }
 0x245   :  { %v552_v45 = vmul.f32 %v548_v41, %v516_v23  ;;  %v550_v46 = vmul.f32 %v1115_v42, %v379_v25 }
 0x246   :  { %v553_v47 = vmul.f32 %v549_v44, %v518_v26 }
 0x247   :  { %v554_v48 = vmul.f32 %v550_v46, %v520_v28 }
 0x248   :  { %v557_v49 = vpack.c.bf16 %v553_v47, %v551_v43 }
 0x249   :  { %v558_v50 = vpack.c.bf16 %v554_v48, %v552_v45 }
 0x24b   :  { %719 = vmatprep.mubr.bf16.mxu1 %v558_v50 }
 0x24c   :  { %720 = vmatmul.mubr.bf16.vlgmr.msra.gmra.mrb[4].mxu1 %v557_v49 }
 0x31f   :  { %v956_v53 = vpop.f32.mrb[4].mxu1 }
 0x320   :  { %v957_v54 = vpop.f32.mrb[5].mxu1 }
 0x321   :  { %v958_v55 = vadd.f32 %v957_v54, %v956_v53  ;;  %v959_v56 = vpop.f32.mrb[6].mxu1 }
 0x322   :  { %v960_v57 = vpop.f32.mrb[7].mxu1 }
 0x323   :  { %v961_v58 = vadd.f32 %v960_v57, %v959_v56 }
 0x325   :  { %v737_v59 = vpack.c.bf16 %v961_v58, %v958_v55 }
 0x327   :  { %988 = vmatmul.mubr.bf16.vlgmr.msra.gmra.mrb[8].mxu0 %v737_v59 }
 0x3fa   :  { %v836_v60 = vpop.f32.mrb[8].mxu0 }
 0x3fb   :  { %843 = vst [vmem:[#allocation14] sm:$0xff] %v836_v60  ;;  %v989_v61 = vpop.f32.mrb[9].mxu0 }
 0x3fc   :  { %v839_v62 = vpop.f32.mrb[10].mxu0 }
 0x3fd   :  { %844 = vst [vmem:[#allocation14 + $0x8] sm:$0xff] %v839_v62  ;;  %v990_v63 = vpop.f32.mrb[11].mxu0 }
 0x3fe   :  { %1237 = shalt.err (!%p1234_p2)
}
 0x3ff   :  { %s1238_s9 = scalar_lea.hbm %s1420_s5, 256 }
 0x400   :  { %p1239_p3 = scmp.ne.s32.totalorder %s1420_s5, %s1238_s9  ;;  %p1242_p4 = scmp.lt.u32.totalorder %s1238_s9, %s1420_s5 }
 0x402   :  { %p1244_p5 = pnand %p1242_p4, %p1239_p3 }
 0x404   :  { %1247 = shalt.err (!%p1244_p5)
}
 0x405   :  { %856 = dma.vmem_to_hbm [thread:$0]  %s851_s1, 256, %s1420_s5, [#allocation7], %s1258_s30, %s1258_s30, %s1259_s6  }
 0x406   :  { %1254 = dma.done.wait [#allocation7], 256  }
 0x407   :  { %1255 = vsyncadd [#allocation7], 4294967040 }
 0x408   :  { %860 = vsyncpa [#allocation6], 1 }
 0x409   :  { %861 = vsyncpa [#allocation9], 1 }
 0x40a   :  { %862 = vsyncpa [#allocation12], 1 }
 0x40b   :  { %863 = vsyncpa [#allocation7], 1 }

</bundles_post_ra>
